<compile_context>
chip_gen: v7x
topology: tpu7x:2x2x1
jax: 0.10.0
libtpu: 0.0.40
codegen_flags: <defaults>
</compile_context>

<pallas_src>
import functools

import jax
import jax.numpy as jnp
from jax.experimental import pallas as pl
from jax.experimental.pallas import tpu as pltpu


# ------------------------------- tile chooser ------------------------------- #

def _pick_tm(m, k, cout, target=512, vmem_budget=8 << 20):
    """Largest M-tile <= target that divides M, is a multiple of 128 and keeps the
    double-buffered bf16 patch+output tiles inside a conservative VMEM budget
    (headroom for v5e's 16 MiB / v7x's 64 MiB)."""
    if m <= 128 or m % 128 != 0:
        return m                                   # tiny layer: one full-M block
    bytes_per_col = 2 * 2 * (k + cout)             # bf16, x2 double buffers, in + out
    cap = max(128, (vmem_budget // bytes_per_col) // 128 * 128)
    tm = min(target, m, cap)
    tm -= tm % 128
    while tm > 128 and m % tm != 0:
        tm -= 128
    return tm if m % tm == 0 else m


# ------------------------------- Pallas kernels ----------------------------- #

def _conv_lrelu_kernel(w_ref, p_ref, o_ref, *, slope):
    # w: [Cout, K] bf16, p: [K, TM] bf16 -> o: [Cout, TM] bf16 (M on the lane axis).
    y = jnp.dot(w_ref[...], p_ref[...], preferred_element_type=jnp.float32)
    o_ref[...] = jnp.maximum(y, slope * y).astype(o_ref.dtype)       # LeakyReLU(0.2)


def _conv_stats_kernel(w_ref, p_ref, y_ref, sum_ref, sq_ref, acc_s, acc_q):
    # Pass 1 of a BN layer: conv-as-matmul tile + per-channel sum/sumsq accumulation.
    i = pl.program_id(0)
    y = jnp.dot(w_ref[...], p_ref[...], preferred_element_type=jnp.float32)  # f32 [C, TM]
    y_ref[...] = y.astype(y_ref.dtype)                                       # bf16 pre-BN

    @pl.when(i == 0)
    def _():
        acc_s[...] = jnp.zeros_like(acc_s)
        acc_q[...] = jnp.zeros_like(acc_q)

    acc_s[...] += jnp.sum(y, axis=1, keepdims=True)
    acc_q[...] += jnp.sum(y * y, axis=1, keepdims=True)

    @pl.when(i == pl.num_programs(0) - 1)
    def _():
        sum_ref[...] = acc_s[...]
        sq_ref[...] = acc_q[...]


def _bn_lrelu_kernel(y_ref, sum_ref, sq_ref, g_ref, b_ref, o_ref, *, inv_m, eps, slope):
    # Pass 2 of a BN layer: normalize (train-mode batch stats, biased var) + LeakyReLU.
    y = y_ref[...].astype(jnp.float32)
    mean = sum_ref[...] * inv_m
    var = sq_ref[...] * inv_m - mean * mean
    scale = jax.lax.rsqrt(var + eps) * g_ref[...]
    shift = b_ref[...] - mean * scale
    h = y * scale + shift
    o_ref[...] = jnp.maximum(h, slope * h).astype(o_ref.dtype)


def _bn_lrelu_head_kernel(y_ref, sum_ref, sq_ref, g_ref, b_ref, w5_ref, sel_ref, o_ref,
                          *, inv_m, eps, slope):
    # Layer 4 pass 2 fused with layer 5: BN + LeakyReLU on the resident [C4, N*16]
    # activation, then the 4x4->1x1 conv as (elementwise mul, sublane reduce, tiny
    # per-sample selection matmul) + sigmoid.  Nothing is written back except [1, N].
    y = y_ref[...].astype(jnp.float32)
    mean = sum_ref[...] * inv_m
    var = sq_ref[...] * inv_m - mean * mean
    scale = jax.lax.rsqrt(var + eps) * g_ref[...]
    shift = b_ref[...] - mean * scale
    h = y * scale + shift
    h = jnp.maximum(h, slope * h)                                     # [C4, N*16]
    col = jnp.sum(h * w5_ref[...], axis=0, keepdims=True)            # [1, N*16]
    logits = jnp.dot(col, sel_ref[...], preferred_element_type=jnp.float32)  # [1, N]
    o_ref[...] = 1.0 / (1.0 + jnp.exp(-logits))                      # exp -> EUP slot


# ------------------------------ Pallas wrappers ----------------------------- #

def conv_lrelu(patches, w_mat, slope=0.2):
    cout, k = w_mat.shape
    m = patches.shape[1]
    tm = _pick_tm(m, k, cout)
    kern = functools.partial(_conv_lrelu_kernel, slope=slope)
    return pl.pallas_call(
        kern,
        out_shape=jax.ShapeDtypeStruct((cout, m), jnp.bfloat16),
        grid=(m // tm,),
        in_specs=[pl.BlockSpec((cout, k), lambda i: (0, 0)),
                  pl.BlockSpec((k, tm), lambda i: (0, i))],
        out_specs=pl.BlockSpec((cout, tm), lambda i: (0, i)),
        compiler_params=pltpu.CompilerParams(dimension_semantics=("parallel",)),
        cost_estimate=pl.CostEstimate(
            flops=2 * cout * k * m, transcendentals=0,
            bytes_accessed=2 * (cout * k + k * m + cout * m)),
    )(w_mat, patches)


def conv_stats(patches, w_mat):
    cout, k = w_mat.shape
    m = patches.shape[1]
    tm = _pick_tm(m, k, cout)
    return pl.pallas_call(
        _conv_stats_kernel,
        out_shape=(jax.ShapeDtypeStruct((cout, m), jnp.bfloat16),
                   jax.ShapeDtypeStruct((cout, 1), jnp.float32),
                   jax.ShapeDtypeStruct((cout, 1), jnp.float32)),
        grid=(m // tm,),
        in_specs=[pl.BlockSpec((cout, k), lambda i: (0, 0)),
                  pl.BlockSpec((k, tm), lambda i: (0, i))],
        out_specs=(pl.BlockSpec((cout, tm), lambda i: (0, i)),
                   pl.BlockSpec((cout, 1), lambda i: (0, 0)),
                   pl.BlockSpec((cout, 1), lambda i: (0, 0))),
        scratch_shapes=[pltpu.VMEM((cout, 1), jnp.float32),
                        pltpu.VMEM((cout, 1), jnp.float32)],
        compiler_params=pltpu.CompilerParams(dimension_semantics=("arbitrary",)),
        cost_estimate=pl.CostEstimate(
            flops=2 * cout * k * m + 3 * cout * m, transcendentals=0,
            bytes_accessed=2 * (cout * k + k * m + cout * m) + 8 * cout),
    )(w_mat, patches)


def bn_lrelu(y, s, ss, gamma, beta, eps=1e-5, slope=0.2):
    cout, m = y.shape
    tm = _pick_tm(m, 0, 2 * cout)
    kern = functools.partial(_bn_lrelu_kernel, inv_m=1.0 / m, eps=eps, slope=slope)
    small = pl.BlockSpec((cout, 1), lambda i: (0, 0))
    return pl.pallas_call(
        kern,
        out_shape=jax.ShapeDtypeStruct((cout, m), jnp.bfloat16),
        grid=(m // tm,),
        in_specs=[pl.BlockSpec((cout, tm), lambda i: (0, i)), small, small, small, small],
        out_specs=pl.BlockSpec((cout, tm), lambda i: (0, i)),
        compiler_params=pltpu.CompilerParams(dimension_semantics=("parallel",)),
        cost_estimate=pl.CostEstimate(
            flops=4 * cout * m, transcendentals=0,
            bytes_accessed=4 * cout * m + 16 * cout),
    )(y, s, ss, gamma, beta)


def bn_lrelu_head(y, s, ss, gamma, beta, w5_tiled, sel, eps=1e-5, slope=0.2):
    cout, m = y.shape
    n = sel.shape[1]
    kern = functools.partial(_bn_lrelu_head_kernel, inv_m=1.0 / m, eps=eps, slope=slope)
    small = pl.BlockSpec((cout, 1), lambda i: (0, 0))
    full = lambda shape: pl.BlockSpec(shape, lambda i: (0, 0))
    return pl.pallas_call(
        kern,
        out_shape=jax.ShapeDtypeStruct((1, n), jnp.float32),
        grid=(1,),
        in_specs=[full((cout, m)), small, small, small, small,
                  full((cout, m)), full((m, n))],
        out_specs=full((1, n)),
        compiler_params=pltpu.CompilerParams(dimension_semantics=("arbitrary",)),
        cost_estimate=pl.CostEstimate(
            flops=8 * cout * m + 2 * m * n, transcendentals=n,
            bytes_accessed=2 * cout * m + 4 * cout * m + 4 * m * n + 4 * n),
    )(y, s, ss, gamma, beta, w5_tiled, sel)


# ------------------------------ im2col (glue) ------------------------------- #

def im2col_cm(x, k, stride, padding):
    """x: [C, N, H, W] -> (patches [C*k*k, N*Hout*Wout] bf16, (Hout, Wout)).

    Row order (c, a, b) matches a row-major reshape of the [Cout, Cin, k, k] conv
    weight; column order (n, ho, wo) lets the [Cout, M] kernel output reshape straight
    into the next layer's channel-major input (no transposes between layers)."""
    c, n, h, w = x.shape
    hout = (h + 2 * padding - k) // stride + 1
    wout = (w + 2 * padding - k) // stride + 1
    if padding:
        x = jnp.pad(x, ((0, 0), (0, 0), (padding, padding), (padding, padding)))
    rows = []
    for a in range(k):
        for b in range(k):
            rows.append(x[:, :, a:a + stride * (hout - 1) + 1:stride,
                              b:b + stride * (wout - 1) + 1:stride])   # [C, N, Ho, Wo]
    pat = jnp.stack(rows, axis=1).reshape(c * k * k, n * hout * wout)
    return pat.astype(jnp.bfloat16), (hout, wout)


# -------------------------------- DNet model -------------------------------- #

def init_dnet_params(key, dfm):
    ks = jax.random.split(key, 5)

    def wconv(k_, cout, cin, ksz):
        return 0.02 * jax.random.normal(k_, (cout, cin, ksz, ksz), jnp.float32)

    return {
        "w1": wconv(ks[0], dfm, 3, 5),
        "w2": wconv(ks[1], dfm * 2, dfm, 4),
        "w3": wconv(ks[2], dfm * 4, dfm * 2, 4),
        "w4": wconv(ks[3], dfm * 8, dfm * 4, 4),
        "w5": wconv(ks[4], 1, dfm * 8, 4),
        # BatchNorm2d defaults: weight (gamma) = 1, bias (beta) = 0
        "g2": jnp.ones((dfm * 2,), jnp.float32), "b2": jnp.zeros((dfm * 2,), jnp.float32),
        "g3": jnp.ones((dfm * 4,), jnp.float32), "b3": jnp.zeros((dfm * 4,), jnp.float32),
        "g4": jnp.ones((dfm * 8,), jnp.float32), "b4": jnp.zeros((dfm * 8,), jnp.float32),
    }


def dnet_forward(params, x):
    """x: [N, 3, 96, 96] NCHW.  Returns [N], matching PyTorch `.view(-1)`.
    All convs bias=False; BatchNorm uses train-mode batch statistics."""
    n = x.shape[0]
    h = jnp.transpose(x, (1, 0, 2, 3))                 # one boundary transpose -> [C, N, H, W]

    def wmat(w):
        return w.reshape(w.shape[0], -1).astype(jnp.bfloat16)

    # Layer 1: Conv2d(3 -> dfm, k=5, s=3, p=1) + LeakyReLU(0.2)
    pat, (ho, wo) = im2col_cm(h, 5, 3, 1)
    h = conv_lrelu(pat, wmat(params["w1"])).reshape(-1, n, ho, wo)

    # Layers 2-3: Conv2d(k=4, s=2, p=1) + BatchNorm2d + LeakyReLU(0.2)  (two tiled passes)
    for wk, gk, bk in (("w2", "g2", "b2"), ("w3", "g3", "b3")):
        pat, (ho, wo) = im2col_cm(h, 4, 2, 1)
        y, s, ss = conv_stats(pat, wmat(params[wk]))
        h = bn_lrelu(y, s, ss, params[gk].reshape(-1, 1),
                     params[bk].reshape(-1, 1)).reshape(-1, n, ho, wo)

    # Layer 4 pass 1 (conv + stats), then pass 2 fused with layer 5 (conv 4x4->1x1 + sigmoid)
    pat, (ho, wo) = im2col_cm(h, 4, 2, 1)              # ho = wo = 4
    y4, s4, ss4 = conv_stats(pat, wmat(params["w4"]))
    c4, m4 = y4.shape
    spatial = ho * wo                                   # 16
    w5_cs = params["w5"].reshape(params["w5"].shape[1], -1)          # [C4, 16]
    w5_tiled = jnp.tile(w5_cs, (1, n)).astype(jnp.float32)           # [C4, N*16]
    sel = (jnp.arange(m4)[:, None] // spatial
           == jnp.arange(n)[None, :]).astype(jnp.float32)            # [N*16, N]
    out = bn_lrelu_head(y4, s4, ss4,
                        params["g4"].reshape(-1, 1), params["b4"].reshape(-1, 1),
                        w5_tiled, sel)                 # [1, N]
    return out.reshape(-1)                             # [N]


if __name__ == "__main__":
    dfm, batch = 4, 4                                  # small demo (opt.dfm = 4)
    key = jax.random.PRNGKey(0)
    kp, kx = jax.random.split(key)
    params = init_dnet_params(kp, dfm)
    # 96x96 is the smallest spatial size for which this conv stack reaches 1x1
    # (the DCGAN-96 pairing), so the output matches PyTorch's .view(-1) -> [N].
    x = jax.random.normal(kx, (batch, 3, 96, 96), jnp.float32)

    out = jax.jit(dnet_forward)(params, x)
    out = jax.block_until_ready(out)
    assert out.shape == (batch,), out.shape
    assert bool(jnp.all(jnp.isfinite(out)))
    assert bool(jnp.all((out >= 0.0) & (out <= 1.0)))
    print("KERNEL_OK")
</pallas_src>

<mosaic_0001>
module attributes {stable_mosaic.version = 11 : i64} {
  func.func @_conv_lrelu_kernel(%arg0: i32, %arg1: memref<4x75xbf16, #tpu.memory_space<vmem>>, %arg2: memref<75x512xbf16, #tpu.memory_space<vmem>>, %arg3: memref<4x512xbf16, #tpu.memory_space<vmem>>) attributes {dimension_semantics = [#tpu.dimension_semantics<parallel>], iteration_bounds = array<i64: 8>, scalar_prefetch = 0 : i64, scratch_operands = 0 : i64, tpu.core_type = #tpu.core_type<tc>, window_params = [{pipeline_mode = #tpu.pipeline_mode<synchronous>, transform_indices = @transform_0, window_bounds = array<i64: 4, 75>}, {transform_indices = @transform_1, window_bounds = array<i64: 75, 512>}, {transform_indices = @transform_2, window_bounds = array<i64: 4, 512>}]} {
    %c0 = arith.constant 0 : index
    %c0_0 = arith.constant 0 : index
    %0 = vector.load %arg1[%c0, %c0_0] : memref<4x75xbf16, #tpu.memory_space<vmem>>, vector<4x75xbf16>
    %c0_1 = arith.constant 0 : index
    %c0_2 = arith.constant 0 : index
    %1 = vector.load %arg2[%c0_1, %c0_2] : memref<75x512xbf16, #tpu.memory_space<vmem>>, vector<75x512xbf16>
    %cst = arith.constant dense<0.000000e+00> : vector<4x512xf32>
    %2 = tpu.matmul %0, %1, %cst {dimension_numbers = #tpu.dot_dimension_numbers<[1], [0], [0], [1], [0, 0, 1, 1], [], []>} : vector<4x75xbf16>, vector<75x512xbf16>, vector<4x512xf32> -> vector<4x512xf32>
    %cst_3 = arith.constant 2.000000e-01 : f32
    %3 = vector.broadcast %cst_3 : f32 to vector<4x512xf32>
    %4 = arith.mulf %3, %2 : vector<4x512xf32>
    %5 = arith.maximumf %2, %4 : vector<4x512xf32>
    %6 = arith.truncf %5 : vector<4x512xf32> to vector<4x512xbf16>
    %c0_4 = arith.constant 0 : index
    %c0_5 = arith.constant 0 : index
    %7 = vector.load %arg3[%c0_4, %c0_5] : memref<4x512xbf16, #tpu.memory_space<vmem>>, vector<4x512xbf16>
    tpu.vector_store %arg3[%c0_4, %c0_5], %6 {strides = array<i32>} : memref<4x512xbf16, #tpu.memory_space<vmem>>, vector<4x512xbf16>,
    return
  }
  func.func @transform_0(%arg0: i32) -> (i32, i32) {
    %c0_i32 = arith.constant 0 : i32
    %c0_i32_0 = arith.constant 0 : i32
    %c0_i32_1 = arith.constant 0 : i32
    return %c0_i32, %c0_i32_0 : i32, i32
  }
  func.func @transform_1(%arg0: i32) -> (i32, i32) {
    %c0_i32 = arith.constant 0 : i32
    %c0_i32_0 = arith.constant 0 : i32
    return %c0_i32, %arg0 : i32, i32
  }
  func.func @transform_2(%arg0: i32) -> (i32, i32) {
    %c0_i32 = arith.constant 0 : i32
    %c0_i32_0 = arith.constant 0 : i32
    return %c0_i32, %arg0 : i32, i32
  }
}

module attributes {stable_mosaic.version = 11 : i64} {
  func.func @_conv_stats_kernel(%arg0: i32, %arg1: memref<8x64xbf16, #tpu.memory_space<vmem>>, %arg2: memref<64x512xbf16, #tpu.memory_space<vmem>>, %arg3: memref<8x512xbf16, #tpu.memory_space<vmem>>, %arg4: memref<8x1xf32, #tpu.memory_space<vmem>>, %arg5: memref<8x1xf32, #tpu.memory_space<vmem>>, %arg6: memref<8x1xf32, #tpu.memory_space<vmem>>, %arg7: memref<8x1xf32, #tpu.memory_space<vmem>>) attributes {dimension_semantics = [#tpu.dimension_semantics<arbitrary>], iteration_bounds = array<i64: 2>, scalar_prefetch = 0 : i64, scratch_operands = 2 : i64, tpu.core_type = #tpu.core_type<tc>, window_params = [{pipeline_mode = #tpu.pipeline_mode<synchronous>, transform_indices = @transform_0, window_bounds = array<i64: 8, 64>}, {transform_indices = @transform_1, window_bounds = array<i64: 64, 512>}, {transform_indices = @transform_2, window_bounds = array<i64: 8, 512>}, {pipeline_mode = #tpu.pipeline_mode<synchronous>, transform_indices = @transform_3, window_bounds = array<i64: 8, 1>}, {pipeline_mode = #tpu.pipeline_mode<synchronous>, transform_indices = @transform_4, window_bounds = array<i64: 8, 1>}]} {
    %c0 = arith.constant 0 : index
    %c0_0 = arith.constant 0 : index
    %0 = vector.load %arg1[%c0, %c0_0] : memref<8x64xbf16, #tpu.memory_space<vmem>>, vector<8x64xbf16>
    %c0_1 = arith.constant 0 : index
    %c0_2 = arith.constant 0 : index
    %1 = vector.load %arg2[%c0_1, %c0_2] : memref<64x512xbf16, #tpu.memory_space<vmem>>, vector<64x512xbf16>
    %cst = arith.constant dense<0.000000e+00> : vector<8x512xf32>
    %2 = tpu.matmul %0, %1, %cst {dimension_numbers = #tpu.dot_dimension_numbers<[1], [0], [0], [1], [0, 0, 1, 1], [], []>} : vector<8x64xbf16>, vector<64x512xbf16>, vector<8x512xf32> -> vector<8x512xf32>
    %3 = arith.truncf %2 : vector<8x512xf32> to vector<8x512xbf16>
    %c0_3 = arith.constant 0 : index
    %c0_4 = arith.constant 0 : index
    %4 = vector.load %arg3[%c0_3, %c0_4] : memref<8x512xbf16, #tpu.memory_space<vmem>>, vector<8x512xbf16>
    tpu.vector_store %arg3[%c0_3, %c0_4], %3 {strides = array<i32>} : memref<8x512xbf16, #tpu.memory_space<vmem>>, vector<8x512xbf16>,
    %c0_i32 = arith.constant 0 : i32
    %5 = arith.cmpi eq, %arg0, %c0_i32 : i32
    %6 = arith.extui %5 : i1 to i32
    %c0_i32_5 = arith.constant 0 : i32
    %7 = arith.cmpi ne, %6, %c0_i32_5 : i32
    scf.if %7 {
      %cst_17 = arith.constant 0.000000e+00 : f32
      %22 = vector.broadcast %cst_17 : f32 to vector<8x1xf32>
      %c0_18 = arith.constant 0 : index
      %c0_19 = arith.constant 0 : index
      %23 = vector.load %arg6[%c0_18, %c0_19] : memref<8x1xf32, #tpu.memory_space<vmem>>, vector<8x1xf32>
      tpu.vector_store %arg6[%c0_18, %c0_19], %22 {strides = array<i32>} : memref<8x1xf32, #tpu.memory_space<vmem>>, vector<8x1xf32>,
      %cst_20 = arith.constant 0.000000e+00 : f32
      %24 = vector.broadcast %cst_20 : f32 to vector<8x1xf32>
      %c0_21 = arith.constant 0 : index
      %c0_22 = arith.constant 0 : index
      %25 = vector.load %arg7[%c0_21, %c0_22] : memref<8x1xf32, #tpu.memory_space<vmem>>, vector<8x1xf32>
      tpu.vector_store %arg7[%c0_21, %c0_22], %24 {strides = array<i32>} : memref<8x1xf32, #tpu.memory_space<vmem>>, vector<8x1xf32>,
    } else {
    }
    %c0_6 = arith.constant 0 : index
    %c0_7 = arith.constant 0 : index
    %8 = vector.load %arg6[%c0_6, %c0_7] : memref<8x1xf32, #tpu.memory_space<vmem>>, vector<8x1xf32>
    %cst_8 = arith.constant dense<0.000000e+00> : vector<8xf32>
    %9 = vector.multi_reduction <add>, %2, %cst_8 [1] : vector<8x512xf32> to vector<8xf32>
    %10 = vector.shape_cast %9 : vector<8xf32> to vector<8x1xf32>
    %11 = arith.addf %8, %10 : vector<8x1xf32>
    %c0_9 = arith.constant 0 : index
    %c0_10 = arith.constant 0 : index
    %12 = vector.load %arg6[%c0_9, %c0_10] : memref<8x1xf32, #tpu.memory_space<vmem>>, vector<8x1xf32>
    tpu.vector_store %arg6[%c0_9, %c0_10], %11 {strides = array<i32>} : memref<8x1xf32, #tpu.memory_space<vmem>>, vector<8x1xf32>,
    %c0_11 = arith.constant 0 : index
    %c0_12 = arith.constant 0 : index
    %13 = vector.load %arg7[%c0_11, %c0_12] : memref<8x1xf32, #tpu.memory_space<vmem>>, vector<8x1xf32>
    %14 = arith.mulf %2, %2 : vector<8x512xf32>
    %cst_13 = arith.constant dense<0.000000e+00> : vector<8xf32>
    %15 = vector.multi_reduction <add>, %14, %cst_13 [1] : vector<8x512xf32> to vector<8xf32>
    %16 = vector.shape_cast %15 : vector<8xf32> to vector<8x1xf32>
    %17 = arith.addf %13, %16 : vector<8x1xf32>
    %c0_14 = arith.constant 0 : index
    %c0_15 = arith.constant 0 : index
    %18 = vector.load %arg7[%c0_14, %c0_15] : memref<8x1xf32, #tpu.memory_space<vmem>>, vector<8x1xf32>
    tpu.vector_store %arg7[%c0_14, %c0_15], %17 {strides = array<i32>} : memref<8x1xf32, #tpu.memory_space<vmem>>, vector<8x1xf32>,
    %c1_i32 = arith.constant 1 : i32
    %19 = arith.cmpi eq, %arg0, %c1_i32 : i32
    %20 = arith.extui %19 : i1 to i32
    %c0_i32_16 = arith.constant 0 : i32
    %21 = arith.cmpi ne, %20, %c0_i32_16 : i32
    scf.if %21 {
      %c0_17 = arith.constant 0 : index
      %c0_18 = arith.constant 0 : index
      %22 = vector.load %arg6[%c0_17, %c0_18] : memref<8x1xf32, #tpu.memory_space<vmem>>, vector<8x1xf32>
      %c0_19 = arith.constant 0 : index
      %c0_20 = arith.constant 0 : index
      %23 = vector.load %arg4[%c0_19, %c0_20] : memref<8x1xf32, #tpu.memory_space<vmem>>, vector<8x1xf32>
      tpu.vector_store %arg4[%c0_19, %c0_20], %22 {strides = array<i32>} : memref<8x1xf32, #tpu.memory_space<vmem>>, vector<8x1xf32>,
      %c0_21 = arith.constant 0 : index
      %c0_22 = arith.constant 0 : index
      %24 = vector.load %arg7[%c0_21, %c0_22] : memref<8x1xf32, #tpu.memory_space<vmem>>, vector<8x1xf32>
      %c0_23 = arith.constant 0 : index
      %c0_24 = arith.constant 0 : index
      %25 = vector.load %arg5[%c0_23, %c0_24] : memref<8x1xf32, #tpu.memory_space<vmem>>, vector<8x1xf32>
      tpu.vector_store %arg5[%c0_23, %c0_24], %24 {strides = array<i32>} : memref<8x1xf32, #tpu.memory_space<vmem>>, vector<8x1xf32>,
    } else {
    }
    return
  }
  func.func @transform_0(%arg0: i32) -> (i32, i32) {
    %c0_i32 = arith.constant 0 : i32
    %c0_i32_0 = arith.constant 0 : i32
    %c0_i32_1 = arith.constant 0 : i32
    return %c0_i32, %c0_i32_0 : i32, i32
  }
  func.func @transform_1(%arg0: i32) -> (i32, i32) {
    %c0_i32 = arith.constant 0 : i32
    %c0_i32_0 = arith.constant 0 : i32
    return %c0_i32, %arg0 : i32, i32
  }
  func.func @transform_2(%arg0: i32) -> (i32, i32) {
    %c0_i32 = arith.constant 0 : i32
    %c0_i32_0 = arith.constant 0 : i32
    return %c0_i32, %arg0 : i32, i32
  }
  func.func @transform_3(%arg0: i32) -> (i32, i32) {
    %c0_i32 = arith.constant 0 : i32
    %c0_i32_0 = arith.constant 0 : i32
    %c0_i32_1 = arith.constant 0 : i32
    return %c0_i32, %c0_i32_0 : i32, i32
  }
  func.func @transform_4(%arg0: i32) -> (i32, i32) {
    %c0_i32 = arith.constant 0 : i32
    %c0_i32_0 = arith.constant 0 : i32
    %c0_i32_1 = arith.constant 0 : i32
    return %c0_i32, %c0_i32_0 : i32, i32
  }
}

module attributes {stable_mosaic.version = 11 : i64} {
  func.func @_bn_lrelu_kernel(%arg0: i32, %arg1: memref<8x512xbf16, #tpu.memory_space<vmem>>, %arg2: memref<8x1xf32, #tpu.memory_space<vmem>>, %arg3: memref<8x1xf32, #tpu.memory_space<vmem>>, %arg4: memref<8x1xf32, #tpu.memory_space<vmem>>, %arg5: memref<8x1xf32, #tpu.memory_space<vmem>>, %arg6: memref<8x512xbf16, #tpu.memory_space<vmem>>) attributes {dimension_semantics = [#tpu.dimension_semantics<parallel>], iteration_bounds = array<i64: 2>, scalar_prefetch = 0 : i64, scratch_operands = 0 : i64, tpu.core_type = #tpu.core_type<tc>, window_params = [{transform_indices = @transform_0, window_bounds = array<i64: 8, 512>}, {pipeline_mode = #tpu.pipeline_mode<synchronous>, transform_indices = @transform_1, window_bounds = array<i64: 8, 1>}, {pipeline_mode = #tpu.pipeline_mode<synchronous>, transform_indices = @transform_2, window_bounds = array<i64: 8, 1>}, {pipeline_mode = #tpu.pipeline_mode<synchronous>, transform_indices = @transform_3, window_bounds = array<i64: 8, 1>}, {pipeline_mode = #tpu.pipeline_mode<synchronous>, transform_indices = @transform_4, window_bounds = array<i64: 8, 1>}, {transform_indices = @transform_5, window_bounds = array<i64: 8, 512>}]} {
    %c0 = arith.constant 0 : index
    %c0_0 = arith.constant 0 : index
    %0 = vector.load %arg1[%c0, %c0_0] : memref<8x512xbf16, #tpu.memory_space<vmem>>, vector<8x512xbf16>
    %1 = arith.extf %0 : vector<8x512xbf16> to vector<8x512xf32>
    %c0_1 = arith.constant 0 : index
    %c0_2 = arith.constant 0 : index
    %2 = vector.load %arg2[%c0_1, %c0_2] : memref<8x1xf32, #tpu.memory_space<vmem>>, vector<8x1xf32>
    %cst = arith.constant 9.765625E-4 : f32
    %3 = vector.broadcast %cst : f32 to vector<8x1xf32>
    %4 = arith.mulf %2, %3 : vector<8x1xf32>
    %c0_3 = arith.constant 0 : index
    %c0_4 = arith.constant 0 : index
    %5 = vector.load %arg3[%c0_3, %c0_4] : memref<8x1xf32, #tpu.memory_space<vmem>>, vector<8x1xf32>
    %cst_5 = arith.constant 9.765625E-4 : f32
    %6 = vector.broadcast %cst_5 : f32 to vector<8x1xf32>
    %7 = arith.mulf %5, %6 : vector<8x1xf32>
    %8 = arith.mulf %4, %4 : vector<8x1xf32>
    %9 = arith.subf %7, %8 : vector<8x1xf32>
    %cst_6 = arith.constant 9.99999974E-6 : f32
    %10 = vector.broadcast %cst_6 : f32 to vector<8x1xf32>
    %11 = arith.addf %9, %10 : vector<8x1xf32>
    %12 = math.rsqrt %11 : vector<8x1xf32>
    %c0_7 = arith.constant 0 : index
    %c0_8 = arith.constant 0 : index
    %13 = vector.load %arg4[%c0_7, %c0_8] : memref<8x1xf32, #tpu.memory_space<vmem>>, vector<8x1xf32>
    %14 = arith.mulf %12, %13 : vector<8x1xf32>
    %c0_9 = arith.constant 0 : index
    %c0_10 = arith.constant 0 : index
    %15 = vector.load %arg5[%c0_9, %c0_10] : memref<8x1xf32, #tpu.memory_space<vmem>>, vector<8x1xf32>
    %16 = arith.mulf %4, %14 : vector<8x1xf32>
    %17 = arith.subf %15, %16 : vector<8x1xf32>
    %18 = vector.broadcast %14 : vector<8x1xf32> to vector<8x512xf32>
    %19 = arith.mulf %1, %18 : vector<8x512xf32>
    %20 = vector.broadcast %17 : vector<8x1xf32> to vector<8x512xf32>
    %21 = arith.addf %19, %20 : vector<8x512xf32>
    %cst_11 = arith.constant 2.000000e-01 : f32
    %22 = vector.broadcast %cst_11 : f32 to vector<8x512xf32>
    %23 = arith.mulf %22, %21 : vector<8x512xf32>
    %24 = arith.maximumf %21, %23 : vector<8x512xf32>
    %25 = arith.truncf %24 : vector<8x512xf32> to vector<8x512xbf16>
    %c0_12 = arith.constant 0 : index
    %c0_13 = arith.constant 0 : index
    %26 = vector.load %arg6[%c0_12, %c0_13] : memref<8x512xbf16, #tpu.memory_space<vmem>>, vector<8x512xbf16>
    tpu.vector_store %arg6[%c0_12, %c0_13], %25 {strides = array<i32>} : memref<8x512xbf16, #tpu.memory_space<vmem>>, vector<8x512xbf16>,
    return
  }
  func.func @transform_0(%arg0: i32) -> (i32, i32) {
    %c0_i32 = arith.constant 0 : i32
    %c0_i32_0 = arith.constant 0 : i32
    return %c0_i32, %arg0 : i32, i32
  }
  func.func @transform_1(%arg0: i32) -> (i32, i32) {
    %c0_i32 = arith.constant 0 : i32
    %c0_i32_0 = arith.constant 0 : i32
    %c0_i32_1 = arith.constant 0 : i32
    return %c0_i32, %c0_i32_0 : i32, i32
  }
  func.func @transform_2(%arg0: i32) -> (i32, i32) {
    %c0_i32 = arith.constant 0 : i32
    %c0_i32_0 = arith.constant 0 : i32
    %c0_i32_1 = arith.constant 0 : i32
    return %c0_i32, %c0_i32_0 : i32, i32
  }
  func.func @transform_3(%arg0: i32) -> (i32, i32) {
    %c0_i32 = arith.constant 0 : i32
    %c0_i32_0 = arith.constant 0 : i32
    %c0_i32_1 = arith.constant 0 : i32
    return %c0_i32, %c0_i32_0 : i32, i32
  }
  func.func @transform_4(%arg0: i32) -> (i32, i32) {
    %c0_i32 = arith.constant 0 : i32
    %c0_i32_0 = arith.constant 0 : i32
    %c0_i32_1 = arith.constant 0 : i32
    return %c0_i32, %c0_i32_0 : i32, i32
  }
  func.func @transform_5(%arg0: i32) -> (i32, i32) {
    %c0_i32 = arith.constant 0 : i32
    %c0_i32_0 = arith.constant 0 : i32
    return %c0_i32, %arg0 : i32, i32
  }
}

module attributes {stable_mosaic.version = 11 : i64} {
  func.func @_conv_stats_kernel(%arg0: i32, %arg1: memref<16x128xbf16, #tpu.memory_space<vmem>>, %arg2: memref<128x256xbf16, #tpu.memory_space<vmem>>, %arg3: memref<16x256xbf16, #tpu.memory_space<vmem>>, %arg4: memref<16x1xf32, #tpu.memory_space<vmem>>, %arg5: memref<16x1xf32, #tpu.memory_space<vmem>>, %arg6: memref<16x1xf32, #tpu.memory_space<vmem>>, %arg7: memref<16x1xf32, #tpu.memory_space<vmem>>) attributes {dimension_semantics = [#tpu.dimension_semantics<arbitrary>], iteration_bounds = array<i64: 1>, scalar_prefetch = 0 : i64, scratch_operands = 2 : i64, tpu.core_type = #tpu.core_type<tc>, window_params = [{pipeline_mode = #tpu.pipeline_mode<synchronous>, transform_indices = @transform_0, window_bounds = array<i64: 16, 128>}, {transform_indices = @transform_1, window_bounds = array<i64: 128, 256>}, {transform_indices = @transform_2, window_bounds = array<i64: 16, 256>}, {pipeline_mode = #tpu.pipeline_mode<synchronous>, transform_indices = @transform_3, window_bounds = array<i64: 16, 1>}, {pipeline_mode = #tpu.pipeline_mode<synchronous>, transform_indices = @transform_4, window_bounds = array<i64: 16, 1>}]} {
    %c0 = arith.constant 0 : index
    %c0_0 = arith.constant 0 : index
    %0 = vector.load %arg1[%c0, %c0_0] : memref<16x128xbf16, #tpu.memory_space<vmem>>, vector<16x128xbf16>
    %c0_1 = arith.constant 0 : index
    %c0_2 = arith.constant 0 : index
    %1 = vector.load %arg2[%c0_1, %c0_2] : memref<128x256xbf16, #tpu.memory_space<vmem>>, vector<128x256xbf16>
    %cst = arith.constant dense<0.000000e+00> : vector<16x256xf32>
    %2 = tpu.matmul %0, %1, %cst {dimension_numbers = #tpu.dot_dimension_numbers<[1], [0], [0], [1], [0, 0, 1, 1], [], []>} : vector<16x128xbf16>, vector<128x256xbf16>, vector<16x256xf32> -> vector<16x256xf32>
    %3 = arith.truncf %2 : vector<16x256xf32> to vector<16x256xbf16>
    %c0_3 = arith.constant 0 : index
    %c0_4 = arith.constant 0 : index
    %4 = vector.load %arg3[%c0_3, %c0_4] : memref<16x256xbf16, #tpu.memory_space<vmem>>, vector<16x256xbf16>
    tpu.vector_store %arg3[%c0_3, %c0_4], %3 {strides = array<i32>} : memref<16x256xbf16, #tpu.memory_space<vmem>>, vector<16x256xbf16>,
    %c0_i32 = arith.constant 0 : i32
    %5 = arith.cmpi eq, %arg0, %c0_i32 : i32
    %6 = arith.extui %5 : i1 to i32
    %c0_i32_5 = arith.constant 0 : i32
    %7 = arith.cmpi ne, %6, %c0_i32_5 : i32
    scf.if %7 {
      %cst_18 = arith.constant 0.000000e+00 : f32
      %22 = vector.broadcast %cst_18 : f32 to vector<16x1xf32>
      %c0_19 = arith.constant 0 : index
      %c0_20 = arith.constant 0 : index
      %23 = vector.load %arg6[%c0_19, %c0_20] : memref<16x1xf32, #tpu.memory_space<vmem>>, vector<16x1xf32>
      tpu.vector_store %arg6[%c0_19, %c0_20], %22 {strides = array<i32>} : memref<16x1xf32, #tpu.memory_space<vmem>>, vector<16x1xf32>,
      %cst_21 = arith.constant 0.000000e+00 : f32
      %24 = vector.broadcast %cst_21 : f32 to vector<16x1xf32>
      %c0_22 = arith.constant 0 : index
      %c0_23 = arith.constant 0 : index
      %25 = vector.load %arg7[%c0_22, %c0_23] : memref<16x1xf32, #tpu.memory_space<vmem>>, vector<16x1xf32>
      tpu.vector_store %arg7[%c0_22, %c0_23], %24 {strides = array<i32>} : memref<16x1xf32, #tpu.memory_space<vmem>>, vector<16x1xf32>,
    } else {
    }
    %c0_6 = arith.constant 0 : index
    %c0_7 = arith.constant 0 : index
    %8 = vector.load %arg6[%c0_6, %c0_7] : memref<16x1xf32, #tpu.memory_space<vmem>>, vector<16x1xf32>
    %cst_8 = arith.constant dense<0.000000e+00> : vector<16xf32>
    %9 = vector.multi_reduction <add>, %2, %cst_8 [1] : vector<16x256xf32> to vector<16xf32>
    %10 = vector.shape_cast %9 : vector<16xf32> to vector<16x1xf32>
    %11 = arith.addf %8, %10 : vector<16x1xf32>
    %c0_9 = arith.constant 0 : index
    %c0_10 = arith.constant 0 : index
    %12 = vector.load %arg6[%c0_9, %c0_10] : memref<16x1xf32, #tpu.memory_space<vmem>>, vector<16x1xf32>
    tpu.vector_store %arg6[%c0_9, %c0_10], %11 {strides = array<i32>} : memref<16x1xf32, #tpu.memory_space<vmem>>, vector<16x1xf32>,
    %c0_11 = arith.constant 0 : index
    %c0_12 = arith.constant 0 : index
    %13 = vector.load %arg7[%c0_11, %c0_12] : memref<16x1xf32, #tpu.memory_space<vmem>>, vector<16x1xf32>
    %14 = arith.mulf %2, %2 : vector<16x256xf32>
    %cst_13 = arith.constant dense<0.000000e+00> : vector<16xf32>
    %15 = vector.multi_reduction <add>, %14, %cst_13 [1] : vector<16x256xf32> to vector<16xf32>
    %16 = vector.shape_cast %15 : vector<16xf32> to vector<16x1xf32>
    %17 = arith.addf %13, %16 : vector<16x1xf32>
    %c0_14 = arith.constant 0 : index
    %c0_15 = arith.constant 0 : index
    %18 = vector.load %arg7[%c0_14, %c0_15] : memref<16x1xf32, #tpu.memory_space<vmem>>, vector<16x1xf32>
    tpu.vector_store %arg7[%c0_14, %c0_15], %17 {strides = array<i32>} : memref<16x1xf32, #tpu.memory_space<vmem>>, vector<16x1xf32>,
    %c0_i32_16 = arith.constant 0 : i32
    %19 = arith.cmpi eq, %arg0, %c0_i32_16 : i32
    %20 = arith.extui %19 : i1 to i32
    %c0_i32_17 = arith.constant 0 : i32
    %21 = arith.cmpi ne, %20, %c0_i32_17 : i32
    scf.if %21 {
      %c0_18 = arith.constant 0 : index
      %c0_19 = arith.constant 0 : index
      %22 = vector.load %arg6[%c0_18, %c0_19] : memref<16x1xf32, #tpu.memory_space<vmem>>, vector<16x1xf32>
      %c0_20 = arith.constant 0 : index
      %c0_21 = arith.constant 0 : index
      %23 = vector.load %arg4[%c0_20, %c0_21] : memref<16x1xf32, #tpu.memory_space<vmem>>, vector<16x1xf32>
      tpu.vector_store %arg4[%c0_20, %c0_21], %22 {strides = array<i32>} : memref<16x1xf32, #tpu.memory_space<vmem>>, vector<16x1xf32>,
      %c0_22 = arith.constant 0 : index
      %c0_23 = arith.constant 0 : index
      %24 = vector.load %arg7[%c0_22, %c0_23] : memref<16x1xf32, #tpu.memory_space<vmem>>, vector<16x1xf32>
      %c0_24 = arith.constant 0 : index
      %c0_25 = arith.constant 0 : index
      %25 = vector.load %arg5[%c0_24, %c0_25] : memref<16x1xf32, #tpu.memory_space<vmem>>, vector<16x1xf32>
      tpu.vector_store %arg5[%c0_24, %c0_25], %24 {strides = array<i32>} : memref<16x1xf32, #tpu.memory_space<vmem>>, vector<16x1xf32>,
    } else {
    }
    return
  }
  func.func @transform_0(%arg0: i32) -> (i32, i32) {
    %c0_i32 = arith.constant 0 : i32
    %c0_i32_0 = arith.constant 0 : i32
    %c0_i32_1 = arith.constant 0 : i32
    return %c0_i32, %c0_i32_0 : i32, i32
  }
  func.func @transform_1(%arg0: i32) -> (i32, i32) {
    %c0_i32 = arith.constant 0 : i32
    %c0_i32_0 = arith.constant 0 : i32
    return %c0_i32, %arg0 : i32, i32
  }
  func.func @transform_2(%arg0: i32) -> (i32, i32) {
    %c0_i32 = arith.constant 0 : i32
    %c0_i32_0 = arith.constant 0 : i32
    return %c0_i32, %arg0 : i32, i32
  }
  func.func @transform_3(%arg0: i32) -> (i32, i32) {
    %c0_i32 = arith.constant 0 : i32
    %c0_i32_0 = arith.constant 0 : i32
    %c0_i32_1 = arith.constant 0 : i32
    return %c0_i32, %c0_i32_0 : i32, i32
  }
  func.func @transform_4(%arg0: i32) -> (i32, i32) {
    %c0_i32 = arith.constant 0 : i32
    %c0_i32_0 = arith.constant 0 : i32
    %c0_i32_1 = arith.constant 0 : i32
    return %c0_i32, %c0_i32_0 : i32, i32
  }
}

module attributes {stable_mosaic.version = 11 : i64} {
  func.func @_bn_lrelu_kernel(%arg0: i32, %arg1: memref<16x256xbf16, #tpu.memory_space<vmem>>, %arg2: memref<16x1xf32, #tpu.memory_space<vmem>>, %arg3: memref<16x1xf32, #tpu.memory_space<vmem>>, %arg4: memref<16x1xf32, #tpu.memory_space<vmem>>, %arg5: memref<16x1xf32, #tpu.memory_space<vmem>>, %arg6: memref<16x256xbf16, #tpu.memory_space<vmem>>) attributes {dimension_semantics = [#tpu.dimension_semantics<parallel>], iteration_bounds = array<i64: 1>, scalar_prefetch = 0 : i64, scratch_operands = 0 : i64, tpu.core_type = #tpu.core_type<tc>, window_params = [{transform_indices = @transform_0, window_bounds = array<i64: 16, 256>}, {pipeline_mode = #tpu.pipeline_mode<synchronous>, transform_indices = @transform_1, window_bounds = array<i64: 16, 1>}, {pipeline_mode = #tpu.pipeline_mode<synchronous>, transform_indices = @transform_2, window_bounds = array<i64: 16, 1>}, {pipeline_mode = #tpu.pipeline_mode<synchronous>, transform_indices = @transform_3, window_bounds = array<i64: 16, 1>}, {pipeline_mode = #tpu.pipeline_mode<synchronous>, transform_indices = @transform_4, window_bounds = array<i64: 16, 1>}, {transform_indices = @transform_5, window_bounds = array<i64: 16, 256>}]} {
    %c0 = arith.constant 0 : index
    %c0_0 = arith.constant 0 : index
    %0 = vector.load %arg1[%c0, %c0_0] : memref<16x256xbf16, #tpu.memory_space<vmem>>, vector<16x256xbf16>
    %1 = arith.extf %0 : vector<16x256xbf16> to vector<16x256xf32>
    %c0_1 = arith.constant 0 : index
    %c0_2 = arith.constant 0 : index
    %2 = vector.load %arg2[%c0_1, %c0_2] : memref<16x1xf32, #tpu.memory_space<vmem>>, vector<16x1xf32>
    %cst = arith.constant 3.906250e-03 : f32
    %3 = vector.broadcast %cst : f32 to vector<16x1xf32>
    %4 = arith.mulf %2, %3 : vector<16x1xf32>
    %c0_3 = arith.constant 0 : index
    %c0_4 = arith.constant 0 : index
    %5 = vector.load %arg3[%c0_3, %c0_4] : memref<16x1xf32, #tpu.memory_space<vmem>>, vector<16x1xf32>
    %cst_5 = arith.constant 3.906250e-03 : f32
    %6 = vector.broadcast %cst_5 : f32 to vector<16x1xf32>
    %7 = arith.mulf %5, %6 : vector<16x1xf32>
    %8 = arith.mulf %4, %4 : vector<16x1xf32>
    %9 = arith.subf %7, %8 : vector<16x1xf32>
    %cst_6 = arith.constant 9.99999974E-6 : f32
    %10 = vector.broadcast %cst_6 : f32 to vector<16x1xf32>
    %11 = arith.addf %9, %10 : vector<16x1xf32>
    %12 = math.rsqrt %11 : vector<16x1xf32>
    %c0_7 = arith.constant 0 : index
    %c0_8 = arith.constant 0 : index
    %13 = vector.load %arg4[%c0_7, %c0_8] : memref<16x1xf32, #tpu.memory_space<vmem>>, vector<16x1xf32>
    %14 = arith.mulf %12, %13 : vector<16x1xf32>
    %c0_9 = arith.constant 0 : index
    %c0_10 = arith.constant 0 : index
    %15 = vector.load %arg5[%c0_9, %c0_10] : memref<16x1xf32, #tpu.memory_space<vmem>>, vector<16x1xf32>
    %16 = arith.mulf %4, %14 : vector<16x1xf32>
    %17 = arith.subf %15, %16 : vector<16x1xf32>
    %18 = vector.broadcast %14 : vector<16x1xf32> to vector<16x256xf32>
    %19 = arith.mulf %1, %18 : vector<16x256xf32>
    %20 = vector.broadcast %17 : vector<16x1xf32> to vector<16x256xf32>
    %21 = arith.addf %19, %20 : vector<16x256xf32>
    %cst_11 = arith.constant 2.000000e-01 : f32
    %22 = vector.broadcast %cst_11 : f32 to vector<16x256xf32>
    %23 = arith.mulf %22, %21 : vector<16x256xf32>
    %24 = arith.maximumf %21, %23 : vector<16x256xf32>
    %25 = arith.truncf %24 : vector<16x256xf32> to vector<16x256xbf16>
    %c0_12 = arith.constant 0 : index
    %c0_13 = arith.constant 0 : index
    %26 = vector.load %arg6[%c0_12, %c0_13] : memref<16x256xbf16, #tpu.memory_space<vmem>>, vector<16x256xbf16>
    tpu.vector_store %arg6[%c0_12, %c0_13], %25 {strides = array<i32>} : memref<16x256xbf16, #tpu.memory_space<vmem>>, vector<16x256xbf16>,
    return
  }
  func.func @transform_0(%arg0: i32) -> (i32, i32) {
    %c0_i32 = arith.constant 0 : i32
    %c0_i32_0 = arith.constant 0 : i32
    return %c0_i32, %arg0 : i32, i32
  }
  func.func @transform_1(%arg0: i32) -> (i32, i32) {
    %c0_i32 = arith.constant 0 : i32
    %c0_i32_0 = arith.constant 0 : i32
    %c0_i32_1 = arith.constant 0 : i32
    return %c0_i32, %c0_i32_0 : i32, i32
  }
  func.func @transform_2(%arg0: i32) -> (i32, i32) {
    %c0_i32 = arith.constant 0 : i32
    %c0_i32_0 = arith.constant 0 : i32
    %c0_i32_1 = arith.constant 0 : i32
    return %c0_i32, %c0_i32_0 : i32, i32
  }
  func.func @transform_3(%arg0: i32) -> (i32, i32) {
    %c0_i32 = arith.constant 0 : i32
    %c0_i32_0 = arith.constant 0 : i32
    %c0_i32_1 = arith.constant 0 : i32
    return %c0_i32, %c0_i32_0 : i32, i32
  }
  func.func @transform_4(%arg0: i32) -> (i32, i32) {
    %c0_i32 = arith.constant 0 : i32
    %c0_i32_0 = arith.constant 0 : i32
    %c0_i32_1 = arith.constant 0 : i32
    return %c0_i32, %c0_i32_0 : i32, i32
  }
  func.func @transform_5(%arg0: i32) -> (i32, i32) {
    %c0_i32 = arith.constant 0 : i32
    %c0_i32_0 = arith.constant 0 : i32
    return %c0_i32, %arg0 : i32, i32
  }
}

module attributes {stable_mosaic.version = 11 : i64} {
  func.func @_conv_stats_kernel(%arg0: i32, %arg1: memref<32x256xbf16, #tpu.memory_space<vmem>>, %arg2: memref<256x64xbf16, #tpu.memory_space<vmem>>, %arg3: memref<32x64xbf16, #tpu.memory_space<vmem>>, %arg4: memref<32x1xf32, #tpu.memory_space<vmem>>, %arg5: memref<32x1xf32, #tpu.memory_space<vmem>>, %arg6: memref<32x1xf32, #tpu.memory_space<vmem>>, %arg7: memref<32x1xf32, #tpu.memory_space<vmem>>) attributes {dimension_semantics = [#tpu.dimension_semantics<arbitrary>], iteration_bounds = array<i64: 1>, scalar_prefetch = 0 : i64, scratch_operands = 2 : i64, tpu.core_type = #tpu.core_type<tc>, window_params = [{pipeline_mode = #tpu.pipeline_mode<synchronous>, transform_indices = @transform_0, window_bounds = array<i64: 32, 256>}, {transform_indices = @transform_1, window_bounds = array<i64: 256, 64>}, {transform_indices = @transform_2, window_bounds = array<i64: 32, 64>}, {pipeline_mode = #tpu.pipeline_mode<synchronous>, transform_indices = @transform_3, window_bounds = array<i64: 32, 1>}, {pipeline_mode = #tpu.pipeline_mode<synchronous>, transform_indices = @transform_4, window_bounds = array<i64: 32, 1>}]} {
    %c0 = arith.constant 0 : index
    %c0_0 = arith.constant 0 : index
    %0 = vector.load %arg1[%c0, %c0_0] : memref<32x256xbf16, #tpu.memory_space<vmem>>, vector<32x256xbf16>
    %c0_1 = arith.constant 0 : index
    %c0_2 = arith.constant 0 : index
    %1 = vector.load %arg2[%c0_1, %c0_2] : memref<256x64xbf16, #tpu.memory_space<vmem>>, vector<256x64xbf16>
    %cst = arith.constant dense<0.000000e+00> : vector<32x64xf32>
    %2 = tpu.matmul %0, %1, %cst {dimension_numbers = #tpu.dot_dimension_numbers<[1], [0], [0], [1], [0, 0, 1, 1], [], []>} : vector<32x256xbf16>, vector<256x64xbf16>, vector<32x64xf32> -> vector<32x64xf32>
    %3 = arith.truncf %2 : vector<32x64xf32> to vector<32x64xbf16>
    %c0_3 = arith.constant 0 : index
    %c0_4 = arith.constant 0 : index
    %4 = vector.load %arg3[%c0_3, %c0_4] : memref<32x64xbf16, #tpu.memory_space<vmem>>, vector<32x64xbf16>
    tpu.vector_store %arg3[%c0_3, %c0_4], %3 {strides = array<i32>} : memref<32x64xbf16, #tpu.memory_space<vmem>>, vector<32x64xbf16>,
    %c0_i32 = arith.constant 0 : i32
    %5 = arith.cmpi eq, %arg0, %c0_i32 : i32
    %6 = arith.extui %5 : i1 to i32
    %c0_i32_5 = arith.constant 0 : i32
    %7 = arith.cmpi ne, %6, %c0_i32_5 : i32
    scf.if %7 {
      %cst_18 = arith.constant 0.000000e+00 : f32
      %22 = vector.broadcast %cst_18 : f32 to vector<32x1xf32>
      %c0_19 = arith.constant 0 : index
      %c0_20 = arith.constant 0 : index
      %23 = vector.load %arg6[%c0_19, %c0_20] : memref<32x1xf32, #tpu.memory_space<vmem>>, vector<32x1xf32>
      tpu.vector_store %arg6[%c0_19, %c0_20], %22 {strides = array<i32>} : memref<32x1xf32, #tpu.memory_space<vmem>>, vector<32x1xf32>,
      %cst_21 = arith.constant 0.000000e+00 : f32
      %24 = vector.broadcast %cst_21 : f32 to vector<32x1xf32>
      %c0_22 = arith.constant 0 : index
      %c0_23 = arith.constant 0 : index
      %25 = vector.load %arg7[%c0_22, %c0_23] : memref<32x1xf32, #tpu.memory_space<vmem>>, vector<32x1xf32>
      tpu.vector_store %arg7[%c0_22, %c0_23], %24 {strides = array<i32>} : memref<32x1xf32, #tpu.memory_space<vmem>>, vector<32x1xf32>,
    } else {
    }
    %c0_6 = arith.constant 0 : index
    %c0_7 = arith.constant 0 : index
    %8 = vector.load %arg6[%c0_6, %c0_7] : memref<32x1xf32, #tpu.memory_space<vmem>>, vector<32x1xf32>
    %cst_8 = arith.constant dense<0.000000e+00> : vector<32xf32>
    %9 = vector.multi_reduction <add>, %2, %cst_8 [1] : vector<32x64xf32> to vector<32xf32>
    %10 = vector.shape_cast %9 : vector<32xf32> to vector<32x1xf32>
    %11 = arith.addf %8, %10 : vector<32x1xf32>
    %c0_9 = arith.constant 0 : index
    %c0_10 = arith.constant 0 : index
    %12 = vector.load %arg6[%c0_9, %c0_10] : memref<32x1xf32, #tpu.memory_space<vmem>>, vector<32x1xf32>
    tpu.vector_store %arg6[%c0_9, %c0_10], %11 {strides = array<i32>} : memref<32x1xf32, #tpu.memory_space<vmem>>, vector<32x1xf32>,
    %c0_11 = arith.constant 0 : index
    %c0_12 = arith.constant 0 : index
    %13 = vector.load %arg7[%c0_11, %c0_12] : memref<32x1xf32, #tpu.memory_space<vmem>>, vector<32x1xf32>
    %14 = arith.mulf %2, %2 : vector<32x64xf32>
    %cst_13 = arith.constant dense<0.000000e+00> : vector<32xf32>
    %15 = vector.multi_reduction <add>, %14, %cst_13 [1] : vector<32x64xf32> to vector<32xf32>
    %16 = vector.shape_cast %15 : vector<32xf32> to vector<32x1xf32>
    %17 = arith.addf %13, %16 : vector<32x1xf32>
    %c0_14 = arith.constant 0 : index
    %c0_15 = arith.constant 0 : index
    %18 = vector.load %arg7[%c0_14, %c0_15] : memref<32x1xf32, #tpu.memory_space<vmem>>, vector<32x1xf32>
    tpu.vector_store %arg7[%c0_14, %c0_15], %17 {strides = array<i32>} : memref<32x1xf32, #tpu.memory_space<vmem>>, vector<32x1xf32>,
    %c0_i32_16 = arith.constant 0 : i32
    %19 = arith.cmpi eq, %arg0, %c0_i32_16 : i32
    %20 = arith.extui %19 : i1 to i32
    %c0_i32_17 = arith.constant 0 : i32
    %21 = arith.cmpi ne, %20, %c0_i32_17 : i32
    scf.if %21 {
      %c0_18 = arith.constant 0 : index
      %c0_19 = arith.constant 0 : index
      %22 = vector.load %arg6[%c0_18, %c0_19] : memref<32x1xf32, #tpu.memory_space<vmem>>, vector<32x1xf32>
      %c0_20 = arith.constant 0 : index
      %c0_21 = arith.constant 0 : index
      %23 = vector.load %arg4[%c0_20, %c0_21] : memref<32x1xf32, #tpu.memory_space<vmem>>, vector<32x1xf32>
      tpu.vector_store %arg4[%c0_20, %c0_21], %22 {strides = array<i32>} : memref<32x1xf32, #tpu.memory_space<vmem>>, vector<32x1xf32>,
      %c0_22 = arith.constant 0 : index
      %c0_23 = arith.constant 0 : index
      %24 = vector.load %arg7[%c0_22, %c0_23] : memref<32x1xf32, #tpu.memory_space<vmem>>, vector<32x1xf32>
      %c0_24 = arith.constant 0 : index
      %c0_25 = arith.constant 0 : index
      %25 = vector.load %arg5[%c0_24, %c0_25] : memref<32x1xf32, #tpu.memory_space<vmem>>, vector<32x1xf32>
      tpu.vector_store %arg5[%c0_24, %c0_25], %24 {strides = array<i32>} : memref<32x1xf32, #tpu.memory_space<vmem>>, vector<32x1xf32>,
    } else {
    }
    return
  }
  func.func @transform_0(%arg0: i32) -> (i32, i32) {
    %c0_i32 = arith.constant 0 : i32
    %c0_i32_0 = arith.constant 0 : i32
    %c0_i32_1 = arith.constant 0 : i32
    return %c0_i32, %c0_i32_0 : i32, i32
  }
  func.func @transform_1(%arg0: i32) -> (i32, i32) {
    %c0_i32 = arith.constant 0 : i32
    %c0_i32_0 = arith.constant 0 : i32
    return %c0_i32, %arg0 : i32, i32
  }
  func.func @transform_2(%arg0: i32) -> (i32, i32) {
    %c0_i32 = arith.constant 0 : i32
    %c0_i32_0 = arith.constant 0 : i32
    return %c0_i32, %arg0 : i32, i32
  }
  func.func @transform_3(%arg0: i32) -> (i32, i32) {
    %c0_i32 = arith.constant 0 : i32
    %c0_i32_0 = arith.constant 0 : i32
    %c0_i32_1 = arith.constant 0 : i32
    return %c0_i32, %c0_i32_0 : i32, i32
  }
  func.func @transform_4(%arg0: i32) -> (i32, i32) {
    %c0_i32 = arith.constant 0 : i32
    %c0_i32_0 = arith.constant 0 : i32
    %c0_i32_1 = arith.constant 0 : i32
    return %c0_i32, %c0_i32_0 : i32, i32
  }
}

module attributes {stable_mosaic.version = 11 : i64} {
  func.func @_bn_lrelu_head_kernel(%arg0: i32, %arg1: memref<32x64xbf16, #tpu.memory_space<vmem>>, %arg2: memref<32x1xf32, #tpu.memory_space<vmem>>, %arg3: memref<32x1xf32, #tpu.memory_space<vmem>>, %arg4: memref<32x1xf32, #tpu.memory_space<vmem>>, %arg5: memref<32x1xf32, #tpu.memory_space<vmem>>, %arg6: memref<32x64xf32, #tpu.memory_space<vmem>>, %arg7: memref<64x4xf32, #tpu.memory_space<vmem>>, %arg8: memref<1x4xf32, #tpu.memory_space<vmem>>) attributes {dimension_semantics = [#tpu.dimension_semantics<arbitrary>], iteration_bounds = array<i64: 1>, scalar_prefetch = 0 : i64, scratch_operands = 0 : i64, tpu.core_type = #tpu.core_type<tc>, window_params = [{pipeline_mode = #tpu.pipeline_mode<synchronous>, transform_indices = @transform_0, window_bounds = array<i64: 32, 64>}, {pipeline_mode = #tpu.pipeline_mode<synchronous>, transform_indices = @transform_1, window_bounds = array<i64: 32, 1>}, {pipeline_mode = #tpu.pipeline_mode<synchronous>, transform_indices = @transform_2, window_bounds = array<i64: 32, 1>}, {pipeline_mode = #tpu.pipeline_mode<synchronous>, transform_indices = @transform_3, window_bounds = array<i64: 32, 1>}, {pipeline_mode = #tpu.pipeline_mode<synchronous>, transform_indices = @transform_4, window_bounds = array<i64: 32, 1>}, {pipeline_mode = #tpu.pipeline_mode<synchronous>, transform_indices = @transform_5, window_bounds = array<i64: 32, 64>}, {pipeline_mode = #tpu.pipeline_mode<synchronous>, transform_indices = @transform_6, window_bounds = array<i64: 64, 4>}, {pipeline_mode = #tpu.pipeline_mode<synchronous>, transform_indices = @transform_7, window_bounds = array<i64: 1, 4>}]} {
    %c0 = arith.constant 0 : index
    %c0_0 = arith.constant 0 : index
    %0 = vector.load %arg1[%c0, %c0_0] : memref<32x64xbf16, #tpu.memory_space<vmem>>, vector<32x64xbf16>
    %1 = arith.extf %0 : vector<32x64xbf16> to vector<32x64xf32>
    %c0_1 = arith.constant 0 : index
    %c0_2 = arith.constant 0 : index
    %2 = vector.load %arg2[%c0_1, %c0_2] : memref<32x1xf32, #tpu.memory_space<vmem>>, vector<32x1xf32>
    %cst = arith.constant 1.562500e-02 : f32
    %3 = vector.broadcast %cst : f32 to vector<32x1xf32>
    %4 = arith.mulf %2, %3 : vector<32x1xf32>
    %c0_3 = arith.constant 0 : index
    %c0_4 = arith.constant 0 : index
    %5 = vector.load %arg3[%c0_3, %c0_4] : memref<32x1xf32, #tpu.memory_space<vmem>>, vector<32x1xf32>
    %cst_5 = arith.constant 1.562500e-02 : f32
    %6 = vector.broadcast %cst_5 : f32 to vector<32x1xf32>
    %7 = arith.mulf %5, %6 : vector<32x1xf32>
    %8 = arith.mulf %4, %4 : vector<32x1xf32>
    %9 = arith.subf %7, %8 : vector<32x1xf32>
    %cst_6 = arith.constant 9.99999974E-6 : f32
    %10 = vector.broadcast %cst_6 : f32 to vector<32x1xf32>
    %11 = arith.addf %9, %10 : vector<32x1xf32>
    %12 = math.rsqrt %11 : vector<32x1xf32>
    %c0_7 = arith.constant 0 : index
    %c0_8 = arith.constant 0 : index
    %13 = vector.load %arg4[%c0_7, %c0_8] : memref<32x1xf32, #tpu.memory_space<vmem>>, vector<32x1xf32>
    %14 = arith.mulf %12, %13 : vector<32x1xf32>
    %c0_9 = arith.constant 0 : index
    %c0_10 = arith.constant 0 : index
    %15 = vector.load %arg5[%c0_9, %c0_10] : memref<32x1xf32, #tpu.memory_space<vmem>>, vector<32x1xf32>
    %16 = arith.mulf %4, %14 : vector<32x1xf32>
    %17 = arith.subf %15, %16 : vector<32x1xf32>
    %18 = vector.broadcast %14 : vector<32x1xf32> to vector<32x64xf32>
    %19 = arith.mulf %1, %18 : vector<32x64xf32>
    %20 = vector.broadcast %17 : vector<32x1xf32> to vector<32x64xf32>
    %21 = arith.addf %19, %20 : vector<32x64xf32>
    %cst_11 = arith.constant 2.000000e-01 : f32
    %22 = vector.broadcast %cst_11 : f32 to vector<32x64xf32>
    %23 = arith.mulf %22, %21 : vector<32x64xf32>
    %24 = arith.maximumf %21, %23 : vector<32x64xf32>
    %c0_12 = arith.constant 0 : index
    %c0_13 = arith.constant 0 : index
    %25 = vector.load %arg6[%c0_12, %c0_13] : memref<32x64xf32, #tpu.memory_space<vmem>>, vector<32x64xf32>
    %26 = arith.mulf %24, %25 : vector<32x64xf32>
    %cst_14 = arith.constant dense<0.000000e+00> : vector<64xf32>
    %27 = vector.multi_reduction <add>, %26, %cst_14 [0] : vector<32x64xf32> to vector<64xf32>
    %28 = vector.shape_cast %27 : vector<64xf32> to vector<1x64xf32>
    %c0_15 = arith.constant 0 : index
    %c0_16 = arith.constant 0 : index
    %29 = vector.load %arg7[%c0_15, %c0_16] : memref<64x4xf32, #tpu.memory_space<vmem>>, vector<64x4xf32>
    %cst_17 = arith.constant dense<0.000000e+00> : vector<1x4xf32>
    %30 = tpu.matmul %28, %29, %cst_17 {dimension_numbers = #tpu.dot_dimension_numbers<[1], [0], [0], [1], [0, 0, 1, 1], [], []>} : vector<1x64xf32>, vector<64x4xf32>, vector<1x4xf32> -> vector<1x4xf32>
    %cst_18 = arith.constant 0.000000e+00 : f32
    %31 = vector.broadcast %cst_18 : f32 to vector<1x4xf32>
    %32 = arith.subf %31, %30 : vector<1x4xf32>
    %33 = math.exp %32 : vector<1x4xf32>
    %cst_19 = arith.constant 1.000000e+00 : f32
    %34 = vector.broadcast %cst_19 : f32 to vector<1x4xf32>
    %35 = arith.addf %34, %33 : vector<1x4xf32>
    %cst_20 = arith.constant 1.000000e+00 : f32
    %36 = vector.broadcast %cst_20 : f32 to vector<1x4xf32>
    %37 = arith.divf %36, %35 : vector<1x4xf32>
    %c0_21 = arith.constant 0 : index
    %c0_22 = arith.constant 0 : index
    %38 = vector.load %arg8[%c0_21, %c0_22] : memref<1x4xf32, #tpu.memory_space<vmem>>, vector<1x4xf32>
    tpu.vector_store %arg8[%c0_21, %c0_22], %37 {strides = array<i32>} : memref<1x4xf32, #tpu.memory_space<vmem>>, vector<1x4xf32>,
    return
  }
  func.func @transform_0(%arg0: i32) -> (i32, i32) {
    %c0_i32 = arith.constant 0 : i32
    %c0_i32_0 = arith.constant 0 : i32
    %c0_i32_1 = arith.constant 0 : i32
    return %c0_i32, %c0_i32_0 : i32, i32
  }
  func.func @transform_1(%arg0: i32) -> (i32, i32) {
    %c0_i32 = arith.constant 0 : i32
    %c0_i32_0 = arith.constant 0 : i32
    %c0_i32_1 = arith.constant 0 : i32
    return %c0_i32, %c0_i32_0 : i32, i32
  }
  func.func @transform_2(%arg0: i32) -> (i32, i32) {
    %c0_i32 = arith.constant 0 : i32
    %c0_i32_0 = arith.constant 0 : i32
    %c0_i32_1 = arith.constant 0 : i32
    return %c0_i32, %c0_i32_0 : i32, i32
  }
  func.func @transform_3(%arg0: i32) -> (i32, i32) {
    %c0_i32 = arith.constant 0 : i32
    %c0_i32_0 = arith.constant 0 : i32
    %c0_i32_1 = arith.constant 0 : i32
    return %c0_i32, %c0_i32_0 : i32, i32
  }
  func.func @transform_4(%arg0: i32) -> (i32, i32) {
    %c0_i32 = arith.constant 0 : i32
    %c0_i32_0 = arith.constant 0 : i32
    %c0_i32_1 = arith.constant 0 : i32
    return %c0_i32, %c0_i32_0 : i32, i32
  }
  func.func @transform_5(%arg0: i32) -> (i32, i32) {
    %c0_i32 = arith.constant 0 : i32
    %c0_i32_0 = arith.constant 0 : i32
    %c0_i32_1 = arith.constant 0 : i32
    return %c0_i32, %c0_i32_0 : i32, i32
  }
  func.func @transform_6(%arg0: i32) -> (i32, i32) {
    %c0_i32 = arith.constant 0 : i32
    %c0_i32_0 = arith.constant 0 : i32
    %c0_i32_1 = arith.constant 0 : i32
    return %c0_i32, %c0_i32_0 : i32, i32
  }
  func.func @transform_7(%arg0: i32) -> (i32, i32) {
    %c0_i32 = arith.constant 0 : i32
    %c0_i32_0 = arith.constant 0 : i32
    %c0_i32_1 = arith.constant 0 : i32
    return %c0_i32, %c0_i32_0 : i32, i32
  }
}

</mosaic_0001>

<bundles_post_ra>
// kernel: dnet_forward.7
= control target key start
LH: loop header
LB: loop body
LE: loop exit
PB: predicated region body
PF: predicated region fallthrough
CT: control target
= control target key end

     0   :  { %s658_s9 = smov 0   ;;  %s660_s10 = smov 0   ;;  %s779_s0 = inlined_call_operand.vmem [shape: bf16[4,75], index: 0, kind: input, shape index: {}]   ;;  %s780_s1 = inlined_call_operand.vmem [shape: bf16[75,4096], index: 1, kind: input, shape index: {}]   ;;  %s781_s2 = inlined_call_operand.vmem [shape: bf16[4,4096], index: 2, kind: output, shape index: {}]  }
   0x1   :  { %s662_s11 = smov 0  }
   0x2 LB: > { %s521_s12 = sadd.s32 4294967295, %s638_s11   ;;  %s675_s13 = sadd.s32 1, %s638_s11   ;;  %s638_s11 = sphi %s662_s11, %s784_s11   ;;  %s634_s10 = sphi %s660_s10, %s783_s10   ;;  %s630_s9 = sphi %s658_s9, %s782_s9  }
   0x3   : > { %s37_s14 = ssub.s32 %s638_s11, %s675_s13  ;;  %s40_s15 = sadd.s32 1, %s634_s10 }
   0x4   : > { %p38_p0 = scmp.eq.s32.totalorder %s37_s14, 0  ;;  %p47_p1 = scmp.ne.s32.totalorder %s634_s10, %s630_s9 }
   0x5   : > { %p48_p2 = scmp.eq.s32.totalorder %s638_s11, 0  ;;  %p524_p4 = scmp.ge.s32.totalorder %s638_s11, 8 }
   0x6   : > { %s684_s16 = scalar_select %p38_p0, %s634_s10, %s40_s15  }
   0x7   : > { %p49_p3 = por %p48_p2, %p47_p1  ;;  %102 = sbr.rel (%p524_p4) target bundleno = 28 (0x1c), region = 20 }
   0xe   : > { %105 = sbr.rel (!%p49_p3) target bundleno = 28 (0x1c), region = 24  ;;  %s107_s17 = sand.u32 (%p49_p3), 1, %s634_s10  }
   0xf   : > { %s556_s18 = sshll.u32 (%p49_p3), %s638_s11, 4  ;;  %s557_s19 = smul.u32 (%p49_p3), 160, %s107_s17 }
  0x10   : > { %s692_s22 = scalar_lea.vmem (%p49_p3), %s780_s1, %s556_s18 }
  0x11   : > { %v125_v0 = vld [vmem:[%s692_s22] sm:$0xff] (%p49_p3)  ;;  %v127_v1 = vld [vmem:[%s692_s22 + $0x8] sm:$0xff] (%p49_p3)  ;;  %s700_s23 = scalar_lea.vmem (%p49_p3), [#allocation2], %s557_s19 }
  0x12   : > { %v129_v2 = vld [vmem:[%s692_s22 + $0x80] sm:$0xff] (%p49_p3)  ;;  %v131_v3 = vld [vmem:[%s692_s22 + $0x88] sm:$0xff] (%p49_p3)  ;;  %126 = vst [vmem:[%s700_s23] sm:$0xff] (%p49_p3), %v125_v0  ;;  %128 = vst [vmem:[%s700_s23 + $0x8] sm:$0xff] (%p49_p3), %v127_v1 }
  0x13   : > { %v133_v4 = vld [vmem:[%s692_s22 + $0x100] sm:$0xff] (%p49_p3)  ;;  %v135_v5 = vld [vmem:[%s692_s22 + $0x108] sm:$0xff] (%p49_p3)  ;;  %130 = vst [vmem:[%s700_s23 + $0x10] sm:$0xff] (%p49_p3), %v129_v2  ;;  %132 = vst [vmem:[%s700_s23 + $0x18] sm:$0xff] (%p49_p3), %v131_v3 }
  0x14   : > { %134 = vst [vmem:[%s700_s23 + $0x20] sm:$0xff] (%p49_p3), %v133_v4  ;;  %136 = vst [vmem:[%s700_s23 + $0x28] sm:$0xff] (%p49_p3), %v135_v5  ;;  %v137_v6 = vld [vmem:[%s692_s22 + $0x180] sm:$0xff] (%p49_p3)  ;;  %v139_v7 = vld [vmem:[%s692_s22 + $0x188] sm:$0xff] (%p49_p3) }
  0x15   : > { %v141_v8 = vld [vmem:[%s692_s22 + $0x200] sm:$0xff]  ;;  %138 = vst [vmem:[%s700_s23 + $0x30] sm:$0xff] %v137_v6  ;;  %140 = vst [vmem:[%s700_s23 + $0x38] sm:$0xff] %v139_v7  ;;  %v143_v9 = vld [vmem:[%s692_s22 + $0x208] sm:$0xff] }
  0x16   : > { %142 = vst [vmem:[%s700_s23 + $0x40] sm:$0xff] %v141_v8  ;;  %v145_v10 = vld [vmem:[%s692_s22 + $0x280] sm:$0xff]  ;;  %v147_v11 = vld [vmem:[%s692_s22 + $0x288] sm:$0xff]  ;;  %144 = vst [vmem:[%s700_s23 + $0x48] sm:$0xff] %v143_v9 }
  0x17   : > { %146 = vst [vmem:[%s700_s23 + $0x50] sm:$0xff] %v145_v10  ;;  %148 = vst [vmem:[%s700_s23 + $0x58] sm:$0xff] %v147_v11  ;;  %v149_v12 = vld [vmem:[%s692_s22 + $0x300] sm:$0xff]  ;;  %v151_v13 = vld [vmem:[%s692_s22 + $0x308] sm:$0xff] }
  0x18   : > { %v153_v14 = vld [vmem:[%s692_s22 + $0x380] sm:$0xff]  ;;  %150 = vst [vmem:[%s700_s23 + $0x60] sm:$0xff] %v149_v12  ;;  %152 = vst [vmem:[%s700_s23 + $0x68] sm:$0xff] %v151_v13  ;;  %v155_v15 = vld [vmem:[%s692_s22 + $0x388] sm:$0xff] }
  0x19   : > { %154 = vst [vmem:[%s700_s23 + $0x70] sm:$0xff] %v153_v14  ;;  %v157_v16 = vld [vmem:[%s692_s22 + $0x400] sm:$0xff]  ;;  %v159_v17 = vld [vmem:[%s692_s22 + $0x408] sm:$0xff]  ;;  %156 = vst [vmem:[%s700_s23 + $0x78] sm:$0xff] %v155_v15 }
  0x1a   : > { %158 = vst [vmem:[%s700_s23 + $0x80] sm:$0xff] %v157_v16  ;;  %160 = vst [vmem:[%s700_s23 + $0x88] sm:$0xff] %v159_v17  ;;  %v161_v18 = vld [vmem:[%s692_s22 + $0x480] sm:$0xff]  ;;  %v163_v19 = vld [vmem:[%s692_s22 + $0x488] sm:$0xff] }
  0x1b   : > { %162 = vst [vmem:[%s700_s23 + $0x90] sm:$0xff] %v161_v18  ;;  %164 = vst [vmem:[%s700_s23 + $0x98] sm:$0xff] %v163_v19 }
  0x1c PF: > { %p527_p5 = scmp.ge.s32.totalorder %s638_s11, 1  ;;  %p169_p6 = scmp.lt.s32.totalorder %s638_s11, 9 }
  0x1e   : > { %p170_p7 = pnand %p527_p5, %p169_p6 }
  0x1f   : > { %s176_s24 = sand.u32 (!%p170_p7), 1, %s630_s9   ;;  %v640_v20 = vmov (!%p170_p7), 0   ;;  %vm326_vm0 = vcmask (!%p170_p7), 1044480   ;;  %vm327_vm1 = vcmask (!%p170_p7), 1045504   ;;  %v641_v30 = vmov (!%p170_p7), 65535   ;;  %s528_s29 = sshll.u32 (!%p170_p7), %s521_s12, 2 }
  0x20   : > { %173 = sbr.rel (%p170_p7) target bundleno = 281 (0x119), region = 47  ;;  %374 = vmatprep.mubr.bf16.mxu0 (!%p170_p7), %v640_v20  ;;  %415 = vmatprep.mubr.bf16.mxu1 (!%p170_p7), %v640_v20  ;;  %v328_v31 = vsel (!%p170_p7), %vm326_vm0, 4294967295, %v641_v30  ;;  %v205_v48 = vld [vmem:[%s779_s0] sm:$0x3] (!%p170_p7)  ;;  %vm322_vm2 = vcmask (!%p170_p7), 613376   ;;  %v445_v51 = vlaneseq (!%p170_p7)  ;;  %p199_p8 = scmp.lt.s32.totalorder (!%p170_p7), %s528_s29, 31 }
  0x21   : > { %s558_s25 = smul.u32 (!%p170_p7), 160, %s176_s24  ;;  %v329_v39 = vsel (!%p170_p7), %vm327_vm1, %v328_v31, 0  ;;  %v642_v49 = vmov (!%p170_p7), 1983009808  }
  0x22   : > { %v443_v50 = vunpack.c.l.s4 (!%p170_p7), %v642_v49  ;;  %v446_v55 = vshrl.u32 (!%p170_p7), %v445_v51, 7 }
  0x23   : > { %s739_s26 = scalar_lea.vmem (!%p170_p7), [#allocation2], %s558_s25 }
  0x24   : > { %v586_v21 = vld [vmem:[%s739_s26 + $0x4] ss:$16 sps:$4 sm:$0xff] (!%p170_p7)   ;;  %v588_v22 = vld [vmem:[%s739_s26 + $0xc] ss:$16 sps:$4 sm:$0xff] (!%p170_p7)   ;;  %v590_v23 = vld [vmem:[%s739_s26] ss:$16 sps:$4 sm:$0xff] (!%p170_p7)   ;;  %v444_v54 = vunpack.c.0.s8 (!%p170_p7), %v443_v50 }
  0x25   : > { %342 = vmatprep.subr.bf16.mxu0 (!%p170_p7), %v586_v21  ;;  %v591_v24 = vld [vmem:[%s739_s26 + $0x8] ss:$16 sps:$4 sm:$0xff] (!%p170_p7)   ;;  %383 = vmatprep.subr.bf16.mxu1 (!%p170_p7), %v588_v22  ;;  %v592_v25 = vld [vmem:[%s739_s26 + $0x24] ss:$16 sps:$4 sm:$0xff] (!%p170_p7)   ;;  %v594_v26 = vld [vmem:[%s739_s26 + $0x2c] ss:$16 sps:$4 sm:$0xff] (!%p170_p7)  }
  0x26   : > { %343 = vmatpush1.bf16.msra.mxu0 (!%p170_p7), %v590_v23  ;;  %384 = vmatpush1.bf16.msra.mxu1 (!%p170_p7), %v591_v24  ;;  %v596_v27 = vld [vmem:[%s739_s26 + $0x20] ss:$16 sps:$4 sm:$0xff] (!%p170_p7)   ;;  %v597_v28 = vld [vmem:[%s739_s26 + $0x28] ss:$16 sps:$4 sm:$0xff] (!%p170_p7)   ;;  %v598_v29 = vld [vmem:[%s739_s26 + $0x44] ss:$16 sps:$4 sm:$0xff] (!%p170_p7)   ;;  %v447_v5 = vsub.s32 (!%p170_p7), %v444_v54, %v446_v55 }
  0x27   : > { %344 = vmatprep.subr.bf16.mxu0 %v592_v25  ;;  %385 = vmatprep.subr.bf16.mxu1 %v594_v26  ;;  %v600_v32 = vld [vmem:[%s739_s26 + $0x4c] ss:$16 sps:$4 sm:$0xff]   ;;  %v602_v33 = vld [vmem:[%s739_s26 + $0x40] ss:$16 sps:$4 sm:$0xff]   ;;  %v603_v34 = vld [vmem:[%s739_s26 + $0x48] ss:$16 sps:$4 sm:$0xff]  }
  0x28   : > { %v604_v35 = vld [vmem:[%s739_s26 + $0x64] ss:$16 sps:$4 sm:$0xff]   ;;  %v606_v36 = vld [vmem:[%s739_s26 + $0x6c] ss:$16 sps:$4 sm:$0xff]   ;;  %v608_v37 = vld [vmem:[%s739_s26 + $0x60] ss:$16 sps:$4 sm:$0xff]  }
  0x29   : > { %v609_v38 = vld [vmem:[%s739_s26 + $0x68] ss:$16 sps:$4 sm:$0xff]   ;;  %v610_v40 = vld [vmem:[%s739_s26 + $0x84] ss:$16 sps:$4 sm:$0x3f]   ;;  %s786_s29 = smov (!%p199_p8, %s528_s29), 31 }
  0x2a   : > { %345 = vmatpush1.bf16.msra.mxu0 %v596_v27  ;;  %386 = vmatpush1.bf16.msra.mxu1 %v597_v28  ;;  %v612_v41 = vld [vmem:[%s739_s26 + $0x8c] ss:$16 sps:$4 sm:$0x3f]   ;;  %v334_v42 = vand.u32 %v610_v40, %v329_v39  ;;  %v614_v43 = vld [vmem:[%s739_s26 + $0x80] ss:$16 sps:$4 sm:$0x3f]  }
  0x2b   : > { %346 = vmatprep.subr.bf16.mxu0 %v598_v29  ;;  %387 = vmatprep.subr.bf16.mxu1 %v600_v32  ;;  %v615_v44 = vld [vmem:[%s739_s26 + $0x88] ss:$16 sps:$4 sm:$0x3f]   ;;  %v340_v45 = vand.u32 %v612_v41, %v329_v39  ;;  %v331_v46 = vand.u32 %v614_v43, %v329_v39  ;;  %s529_s30 = sshll.u32 %s786_s29, 1 }
  0x2c   : > { %v337_v47 = vand.u32 %v615_v44, %v329_v39  ;;  %s202_s5 = scalar_lea.vmem %s781_s2, %s529_s30 }
  0x2e   : > { %347 = vmatpush1.bf16.msra.mxu0 %v602_v33  ;;  %388 = vmatpush1.bf16.msra.mxu1 %v603_v34 }
  0x2f   : > { %348 = vmatprep.subr.bf16.mxu0 %v604_v35  ;;  %389 = vmatprep.subr.bf16.mxu1 %v606_v36 }
  0x32   : > { %349 = vmatpush1.bf16.msra.mxu0 %v608_v37  ;;  %390 = vmatpush1.bf16.msra.mxu1 %v609_v38 }
  0x33   : > { %350 = vmatprep.subr.bf16.mxu0 %v334_v42  ;;  %391 = vmatprep.subr.bf16.mxu1 %v340_v45 }
  0x36   : > { %351 = vmatpush1.bf16.msra.mxu0 %v331_v46  ;;  %392 = vmatpush1.bf16.msra.mxu1 %v337_v47 }
  0x39   : > { %550 = vmatmul.mubr.msk.bf16.vlgmr.msra.gmra.mrb[0].mxu0 %vm322_vm2, %v205_v48  ;;  %551 = vmatmul.mubr.msk.bf16.vlgmr.msra.gmra.mrb[0].mxu1 %vm322_vm2, %v205_v48 }
 0x10c   : > { %v376_v52 = vpop.f32.mrb[0].mxu0  ;;  %v417_v53 = vpop.f32.mrb[0].mxu1 }
 0x10d   : > { %v424_v56 = vmul.f32 0.2, %v376_v52  ;;  %v426_v57 = vmul.f32 0.2, %v417_v53  ;;  %v378_v58 = vpop.f32.mrb[1].mxu0  ;;  %v419_v59 = vpop.f32.mrb[1].mxu1 }
 0x10e   : > { %v425_v60 = vmul.f32 0.2, %v378_v58  ;;  %v427_v61 = vmul.f32 0.2, %v419_v59  ;;  %v380_v62 = vpop.f32.mrb[2].mxu0  ;;  %v421_v63 = vpop.f32.mrb[2].mxu1 }
 0x10f   : > { %v428_v0 = vmax.f32 %v376_v52, %v424_v56  ;;  %v430_v1 = vmax.f32 %v417_v53, %v426_v57  ;;  %v381_v2 = vpop.f32.mrb[3].mxu0  ;;  %v422_v3 = vpop.f32.mrb[3].mxu1 }
 0x110   : > { %v429_v4 = vmax.f32 %v378_v58, %v425_v60  ;;  %v431_v6 = vmax.f32 %v419_v59, %v427_v61 }
 0x112   : > { %v552_v7 = vpack.c.bf16 %v429_v4, %v428_v0  ;;  %v553_v8 = vpack.c.bf16 %v431_v6, %v430_v1 }
 0x114   : > { %v448_v9 = vrot.slane %v552_v7, %v447_v5  ;;  %v455_v10 = vrot.slane %v553_v8, %v447_v5 }
 0x116   : > { %v456_v11 = vcombine.low %v448_v9, %v455_v10 }
 0x118   : > { %458 = vst [vmem:[%s202_s5] sm:$0xff] %v456_v11 }
 0x119 PF: > { %p9_p9 = scmp.ge.s32.totalorder %s675_s13, 10   ;;  %s782_s9 = smov %s634_s10 }
 0x11a   : > { %s783_s10 = smov %s684_s16  ;;  %s784_s11 = smov %s675_s13 }
 0x11b   :  { %11 = sbr.rel (!%p9_p9) target bundleno = 2 (0x2), region = 86 }

// kernel: dnet_forward.8
= control target key start
LH: loop header
LB: loop body
LE: loop exit
PB: predicated region body
PF: predicated region fallthrough
CT: control target
= control target key end

     0   :  { %s696_s15 = smov 0   ;;  %s698_s16 = smov 0   ;;  %s778_s0 = inlined_call_operand.vmem [shape: bf16[8,64], index: 0, kind: input, shape index: {}]   ;;  %s779_s1 = inlined_call_operand.vmem [shape: bf16[64,1024], index: 1, kind: input, shape index: {}]   ;;  %s780_s2 = inlined_call_operand.vmem [shape: bf16[8,1024], index: 2, kind: output, shape index: {0}]   ;;  %s781_s3 = inlined_call_operand.vmem [shape: f32[8,1], index: 3, kind: output, shape index: {1}]   ;;  %s782_s4 = inlined_call_operand.vmem [shape: f32[8,1], index: 4, kind: output, shape index: {2}]  }
   0x1   :  { %s700_s17 = smov 0  }
   0x2 LB: > { %s712_s18 = sadd.s32 4294967295, %s667_s17   ;;  %s715_s19 = sadd.s32 1, %s667_s17   ;;  %s667_s17 = sphi %s700_s17, %s785_s17   ;;  %s663_s16 = sphi %s698_s16, %s784_s16   ;;  %s659_s15 = sphi %s696_s15, %s783_s15  }
   0x3   : > { %s40_s20 = ssub.s32 %s667_s17, %s715_s19  ;;  %s43_s21 = sadd.s32 1, %s663_s16 }
   0x4   : > { %p41_p0 = scmp.eq.s32.totalorder %s40_s20, 0  ;;  %p50_p1 = scmp.ne.s32.totalorder %s663_s16, %s659_s15 }
   0x5   : > { %p51_p2 = scmp.eq.s32.totalorder %s667_s17, 0  ;;  %p560_p4 = scmp.ge.s32.totalorder %s667_s17, 2 }
   0x6   : > { %s724_s22 = scalar_select %p41_p0, %s663_s16, %s43_s21  }
   0x7   : > { %p52_p3 = por %p51_p2, %p50_p1  ;;  %147 = sbr.rel (%p560_p4) target bundleno = 26 (0x1a), region = 20 }
   0xe   : > { %150 = sbr.rel (!%p52_p3) target bundleno = 26 (0x1a), region = 24  ;;  %s152_s23 = sand.u32 (%p52_p3), 1, %s663_s16  }
   0xf   : > { %s592_s24 = sshll.u32 (%p52_p3), %s667_s17, 4  ;;  %s561_s25 = sshll.u32 (%p52_p3), %s152_s23, 7 }
  0x10   : > { %s732_s28 = scalar_lea.vmem (%p52_p3), %s779_s1, %s592_s24  ;;  %s154_s29 = scalar_lea.vmem (%p52_p3), [#allocation4], %s561_s25 }
  0x11   : > { %v170_v0 = vld [vmem:[%s732_s28] sm:$0xff] (%p52_p3)  ;;  %v172_v1 = vld [vmem:[%s732_s28 + $0x8] sm:$0xff] (%p52_p3) }
  0x12   : > { %v174_v2 = vld [vmem:[%s732_s28 + $0x20] sm:$0xff] (%p52_p3)  ;;  %171 = vst [vmem:[%s154_s29] sm:$0xff] (%p52_p3), %v170_v0  ;;  %173 = vst [vmem:[%s154_s29 + $0x8] sm:$0xff] (%p52_p3), %v172_v1  ;;  %v176_v3 = vld [vmem:[%s732_s28 + $0x28] sm:$0xff] (%p52_p3) }
  0x13   : > { %175 = vst [vmem:[%s154_s29 + $0x10] sm:$0xff] (%p52_p3), %v174_v2  ;;  %v178_v4 = vld [vmem:[%s732_s28 + $0x40] sm:$0xff] (%p52_p3)  ;;  %v180_v5 = vld [vmem:[%s732_s28 + $0x48] sm:$0xff] (%p52_p3)  ;;  %177 = vst [vmem:[%s154_s29 + $0x18] sm:$0xff] (%p52_p3), %v176_v3 }
  0x14   : > { %179 = vst [vmem:[%s154_s29 + $0x20] sm:$0xff] (%p52_p3), %v178_v4  ;;  %181 = vst [vmem:[%s154_s29 + $0x28] sm:$0xff] (%p52_p3), %v180_v5  ;;  %v182_v6 = vld [vmem:[%s732_s28 + $0x60] sm:$0xff] (%p52_p3)  ;;  %v184_v7 = vld [vmem:[%s732_s28 + $0x68] sm:$0xff] (%p52_p3) }
  0x15   : > { %v186_v8 = vld [vmem:[%s732_s28 + $0x80] sm:$0xff]  ;;  %183 = vst [vmem:[%s154_s29 + $0x30] sm:$0xff] %v182_v6  ;;  %185 = vst [vmem:[%s154_s29 + $0x38] sm:$0xff] %v184_v7  ;;  %v188_v9 = vld [vmem:[%s732_s28 + $0x88] sm:$0xff] }
  0x16   : > { %187 = vst [vmem:[%s154_s29 + $0x40] sm:$0xff] %v186_v8  ;;  %v190_v10 = vld [vmem:[%s732_s28 + $0xa0] sm:$0xff]  ;;  %v192_v11 = vld [vmem:[%s732_s28 + $0xa8] sm:$0xff]  ;;  %189 = vst [vmem:[%s154_s29 + $0x48] sm:$0xff] %v188_v9 }
  0x17   : > { %191 = vst [vmem:[%s154_s29 + $0x50] sm:$0xff] %v190_v10  ;;  %193 = vst [vmem:[%s154_s29 + $0x58] sm:$0xff] %v192_v11  ;;  %v194_v12 = vld [vmem:[%s732_s28 + $0xc0] sm:$0xff]  ;;  %v196_v13 = vld [vmem:[%s732_s28 + $0xc8] sm:$0xff] }
  0x18   : > { %v198_v14 = vld [vmem:[%s732_s28 + $0xe0] sm:$0xff]  ;;  %195 = vst [vmem:[%s154_s29 + $0x60] sm:$0xff] %v194_v12  ;;  %197 = vst [vmem:[%s154_s29 + $0x68] sm:$0xff] %v196_v13  ;;  %v200_v15 = vld [vmem:[%s732_s28 + $0xe8] sm:$0xff] }
  0x19   : > { %199 = vst [vmem:[%s154_s29 + $0x70] sm:$0xff] %v198_v14  ;;  %201 = vst [vmem:[%s154_s29 + $0x78] sm:$0xff] %v200_v15 }
  0x1a PF: > { %p564_p5 = scmp.ge.s32.totalorder %s667_s17, 1  ;;  %p206_p6 = scmp.lt.s32.totalorder %s667_s17, 3 }
  0x1c   : > { %p207_p7 = pnand %p564_p5, %p206_p6 }
  0x1d   : > { %s213_s30 = sand.u32 (!%p207_p7), 1, %s659_s15   ;;  %v669_v16 = vmov (!%p207_p7), 0   ;;  %v246_v33 = vld [vmem:[%s778_s0] sm:$0xf] (!%p207_p7)  ;;  %vm343_vm0 = vcmask (!%p207_p7), 523264   ;;  %s566_s9 = sshll.u32 (!%p207_p7), %s712_s18, 2 }
  0x1e   : > { %210 = sbr.rel (%p207_p7) target bundleno = 428 (0x1ac), region = 47  ;;  %s565_s5 = sshll.u32 (!%p207_p7), %s213_s30, 7  ;;  %379 = vmatprep.mubr.bf16.mxu0 (!%p207_p7), %v669_v16  ;;  %420 = vmatprep.mubr.bf16.mxu1 (!%p207_p7), %v669_v16 }
  0x1f   : > { %s215_s6 = scalar_lea.vmem (!%p207_p7), [#allocation4], %s565_s5  ;;  %p240_p8 = scmp.lt.s32.totalorder (!%p207_p7), %s566_s9, 7 }
  0x20   : > { %v621_v17 = vld [vmem:[%s215_s6 + $0x4] ss:$16 sps:$4 sm:$0xff] (!%p207_p7)   ;;  %v623_v18 = vld [vmem:[%s215_s6 + $0xc] ss:$16 sps:$4 sm:$0xff] (!%p207_p7)   ;;  %v625_v19 = vld [vmem:[%s215_s6] ss:$16 sps:$4 sm:$0xff] (!%p207_p7)  }
  0x21   : > { %347 = vmatprep.subr.bf16.mxu0 (!%p207_p7), %v621_v17  ;;  %v626_v20 = vld [vmem:[%s215_s6 + $0x8] ss:$16 sps:$4 sm:$0xff] (!%p207_p7)   ;;  %388 = vmatprep.subr.bf16.mxu1 (!%p207_p7), %v623_v18  ;;  %v627_v21 = vld [vmem:[%s215_s6 + $0x24] ss:$16 sps:$4 sm:$0xff] (!%p207_p7)   ;;  %v629_v22 = vld [vmem:[%s215_s6 + $0x2c] ss:$16 sps:$4 sm:$0xff] (!%p207_p7)  }
  0x22   : > { %348 = vmatpush1.bf16.msra.mxu0 (!%p207_p7), %v625_v19  ;;  %389 = vmatpush1.bf16.msra.mxu1 (!%p207_p7), %v626_v20  ;;  %v631_v23 = vld [vmem:[%s215_s6 + $0x20] ss:$16 sps:$4 sm:$0xff] (!%p207_p7)   ;;  %v632_v24 = vld [vmem:[%s215_s6 + $0x28] ss:$16 sps:$4 sm:$0xff] (!%p207_p7)   ;;  %v633_v25 = vld [vmem:[%s215_s6 + $0x44] ss:$16 sps:$4 sm:$0xff] (!%p207_p7)  }
  0x23   : > { %349 = vmatprep.subr.bf16.mxu0 (!%p207_p7), %v627_v21  ;;  %390 = vmatprep.subr.bf16.mxu1 (!%p207_p7), %v629_v22  ;;  %v635_v26 = vld [vmem:[%s215_s6 + $0x4c] ss:$16 sps:$4 sm:$0xff] (!%p207_p7)   ;;  %v637_v27 = vld [vmem:[%s215_s6 + $0x40] ss:$16 sps:$4 sm:$0xff] (!%p207_p7)   ;;  %v638_v28 = vld [vmem:[%s215_s6 + $0x48] ss:$16 sps:$4 sm:$0xff] (!%p207_p7)  }
  0x24   : > { %v639_v29 = vld [vmem:[%s215_s6 + $0x64] ss:$16 sps:$4 sm:$0xff] (!%p207_p7)   ;;  %v641_v30 = vld [vmem:[%s215_s6 + $0x6c] ss:$16 sps:$4 sm:$0xff] (!%p207_p7)   ;;  %v643_v31 = vld [vmem:[%s215_s6 + $0x60] ss:$16 sps:$4 sm:$0xff] (!%p207_p7)  }
  0x25   : > { %v644_v32 = vld [vmem:[%s215_s6 + $0x68] ss:$16 sps:$4 sm:$0xff]   ;;  %s787_s9 = smov (!%p240_p8, %s566_s9), 7  ;;  %p588_p9 = scmp.ne.s32.totalorder %s712_s18, 0 }
  0x26   : > { %350 = vmatpush1.bf16.msra.mxu0 %v631_v23  ;;  %391 = vmatpush1.bf16.msra.mxu1 %v632_v24  ;;  %s567_s10 = sshll.u32 %s787_s9, 2  ;;  %vm451_vm1 = vcmask (!%p588_p9), 7168   ;;  %v670_v44 = vmov (!%p588_p9), 0.0  }
  0x27   : > { %351 = vmatprep.subr.bf16.mxu0 %v633_v25  ;;  %392 = vmatprep.subr.bf16.mxu1 %v635_v26  ;;  %s243_s13 = scalar_lea.vmem %s780_s2, %s567_s10  ;;  %452 = vst.msk [vmem:[#allocation2] sm:$0xff] (!%p588_p9), %vm451_vm1, %v670_v44  ;;  %453 = vst.msk [vmem:[#allocation3] sm:$0xff] (!%p588_p9), %vm451_vm1, %v670_v44 }
  0x2a   : > { %352 = vmatpush1.bf16.msra.mxu0 %v637_v27  ;;  %393 = vmatpush1.bf16.msra.mxu1 %v638_v28 }
  0x2b   : > { %353 = vmatprep.subr.bf16.mxu0 %v639_v29  ;;  %394 = vmatprep.subr.bf16.mxu1 %v641_v30 }
  0x2e   : > { %354 = vmatpush1.bf16.msra.mxu0 %v643_v31  ;;  %395 = vmatpush1.bf16.msra.mxu1 %v644_v32 }
  0x31   : > { %584 = vmatmul.mubr.msk.bf16.vlgmr.msra.gmra.mrb[0].mxu0 %vm343_vm0, %v246_v33  ;;  %585 = vmatmul.mubr.msk.bf16.vlgmr.msra.gmra.mrb[0].mxu1 %vm343_vm0, %v246_v33 }
 0x102   : > { %450 = sbr.rel (%p588_p9) target bundleno = 265 (0x109), region = 55 }
 0x104   : > { %v381_v34 = vpop.f32.mrb[0].mxu0  ;;  %v422_v35 = vpop.f32.mrb[0].mxu1 }
 0x105   : > { %v383_v36 = vpop.f32.mrb[1].mxu0  ;;  %v424_v37 = vpop.f32.mrb[1].mxu1 }
 0x106   : > { %v593_v38 = vpack.c.bf16 %v383_v36, %v381_v34  ;;  %v594_v39 = vpack.c.bf16 %v424_v37, %v422_v35  ;;  %v385_v40 = vpop.f32.mrb[2].mxu0  ;;  %v426_v41 = vpop.f32.mrb[2].mxu1 }
 0x107   : > { %v386_v42 = vpop.f32.mrb[3].mxu0  ;;  %v427_v43 = vpop.f32.mrb[3].mxu1 }
 0x108   : > { %445 = vst [vmem:[%s243_s13] sm:$0xff] %v593_v38  ;;  %446 = vst [vmem:[%s243_s13 + $0x8] sm:$0xff] %v594_v39 }
 0x109 PF: > { %v455_v45 = vadd.f32 %v383_v36, %v381_v34  ;;  %v464_v46 = vmul.f32 %v381_v34, %v381_v34  ;;  %v465_v47 = vmul.f32 %v383_v36, %v383_v36  ;;  %v466_v48 = vmul.f32 %v422_v35, %v422_v35  ;;  %v454_v55 = vld [vmem:[#allocation2] sm:$0xff]  ;;  %v463_v58 = vld [vmem:[#allocation3] sm:$0xff]  ;;  %p589_p10 = scmp.ne.s32.totalorder %s712_s18, 1 }
 0x10a   : > { %v467_v50 = vmul.f32 %v424_v37, %v424_v37  ;;  %vm461_vm2 = vcmask 7168  }
 0x10b   : > { %v456_v49 = vadd.f32 %v455_v45, %v422_v35  ;;  %v468_v51 = vadd.f32 %v465_v47, %v464_v46 }
 0x10d   : > { %v457_v52 = vadd.f32 %v456_v49, %v424_v37  ;;  %v469_v53 = vadd.f32 %v468_v51, %v466_v48 }
 0x10f   : > { %458 = vadd.xlane.f32.xlu0 %v457_v52  ;;  %v470_v54 = vadd.f32 %v469_v53, %v467_v50 }
 0x113   : > { %471 = vadd.xlane.f32.xlu0 %v470_v54 }
 0x19c   : > { %v459_v56 = vpop.xlane.xlu0 %458 }
 0x19d   : > { %v460_v57 = vadd.f32 %v459_v56, %v454_v55  ;;  %478 = sbr.rel (%p589_p10) target bundleno = 428 (0x1ac), region = 59 }
 0x19f   : > { %462 = vst.msk [vmem:[#allocation2] sm:$0xff] %vm461_vm2, %v460_v57 }
 0x1a0   : > { %v472_v59 = vpop.xlane.xlu0 %471 }
 0x1a1   : > { %v473_v60 = vadd.f32 %v472_v59, %v463_v58 }
 0x1a3   : > { %474 = vst.msk [vmem:[#allocation3] sm:$0xff] %vm461_vm2, %v473_v60 }
 0x1a6   : > { %v479_v61 = vld [vmem:[#allocation2] sm:$0xff] }
 0x1a7   : > { %480 = vst.msk [vmem:[%s781_s3] sm:$0xff] %vm461_vm2, %v479_v61 }
 0x1aa   : > { %v481_v62 = vld [vmem:[#allocation3] sm:$0xff] }
 0x1ab   : > { %482 = vst.msk [vmem:[%s782_s4] sm:$0xff] %vm461_vm2, %v481_v62 }
 0x1ac PF: > { %p12_p11 = scmp.ge.s32.totalorder %s715_s19, 4   ;;  %s783_s15 = smov %s663_s16 }
 0x1ad   : > { %s784_s16 = smov %s724_s22  ;;  %s785_s17 = smov %s715_s19 }
 0x1ae   :  { %14 = sbr.rel (!%p12_p11) target bundleno = 2 (0x2), region = 110 }

// kernel: dnet_forward.9
= control target key start
LH: loop header
LB: loop body
LE: loop exit
PB: predicated region body
PF: predicated region fallthrough
CT: control target
= control target key end

     0   :  { %s413_s18 = smov 0   ;;  %s442_s0 = inlined_call_operand.vmem [shape: bf16[8,1024], index: 0, kind: input, shape index: {}]   ;;  %s443_s1 = inlined_call_operand.vmem [shape: f32[8,1], index: 1, kind: input, shape index: {}]   ;;  %s444_s2 = inlined_call_operand.vmem [shape: f32[8,1], index: 2, kind: input, shape index: {}]   ;;  %s445_s3 = inlined_call_operand.vmem [shape: f32[8,1], index: 3, kind: input, shape index: {}]   ;;  %s446_s4 = inlined_call_operand.vmem [shape: f32[8,1], index: 4, kind: input, shape index: {}]   ;;  %s447_s5 = inlined_call_operand.vmem [shape: bf16[8,1024], index: 5, kind: output, shape index: {}]  }
   0x1 LB: > { %s347_s19 = sadd.s32 4294967295, %s380_s18   ;;  %p351_p0 = scmp.ge.s32.totalorder %s380_s18, 1  ;;  %s380_s18 = sphi %s413_s18, %s15_s18  }
   0x2   : > { %p188_p1 = scmp.lt.s32.totalorder %s380_s18, 3 }
   0x4   : > { %p189_p2 = pnand %p351_p0, %p188_p1 }
   0x5   : > { %v234_v0 = vld [vmem:[%s443_s1] sm:$0xff] (!%p189_p2)  ;;  %v382_v2 = vmov (!%p189_p2), 0   ;;  %s352_s28 = sshll.u32 (!%p189_p2), %s347_s19, 2 }
   0x6   : > { %192 = sbr.rel (%p189_p2) target bundleno = 169 (0xa9), region = 40  ;;  %v236_v1 = vld [vmem:[%s444_s2] sm:$0xff] (!%p189_p2)  ;;  %371 = vset.pattern.permute.xlu0 (!%p189_p2), %v382_v2  ;;  %v235_v3 = vmul.f32 (!%p189_p2), 0.0009765625, %v234_v0  ;;  %p217_p3 = scmp.lt.s32.totalorder (!%p189_p2), %s352_s28, 7 }
   0x7   : > { %v237_v4 = vmul.f32 (!%p189_p2), 0.0009765625, %v236_v1  ;;  %v242_v8 = vld [vmem:[%s445_s3] sm:$0xff] (!%p189_p2) }
   0x8   : > { %v238_v5 = vmul.f32 (!%p189_p2), %v235_v3, %v235_v3  ;;  %v244_v11 = vld [vmem:[%s446_s4] sm:$0xff] (!%p189_p2) }
   0xa   : > { %v239_v6 = vsub.f32 (!%p189_p2), %v237_v4, %v238_v5 }
   0xc   : > { %v240_v7 = vadd.f32 (!%p189_p2), 1e-05, %v239_v6 }
   0xd   : > { %s449_s28 = smov (!%p217_p3, %s352_s28), 7 }
   0xe   : > { %372 = vrsqrt.f32 %v240_v7  ;;  %s353_s29 = sshll.u32 %s449_s28, 2 }
   0xf   : > { %s220_s7 = scalar_lea.vmem %s442_s0, %s353_s29  ;;  %s226_s10 = scalar_lea.vmem %s447_s5, %s353_s29 }
  0x10   : > { %v228_v14 = vld [vmem:[%s220_s7] sm:$0xff]  ;;  %v229_v15 = vld [vmem:[%s220_s7 + $0x8] sm:$0xff] }
  0x11   : > { %v230_v16 = vunpack.c.l.bf16 %v228_v14  ;;  %v231_v17 = vunpack.c.h.bf16 %v228_v14  ;;  %v232_v18 = vunpack.c.l.bf16 %v229_v15  ;;  %v233_v19 = vunpack.c.h.bf16 %v229_v15 }
  0x18   : > { %v373_v9 = vpop.eup %372 }
  0x19   : > { %v243_v10 = vmul.f32 %v373_v9, %v242_v8 }
  0x1b   : > { %249 = vperm.xlu0 %371, %v243_v10   ;;  %v245_v12 = vmul.f32 %v243_v10, %v235_v3 }
  0x1d   : > { %v246_v13 = vsub.f32 %v244_v11, %v245_v12 }
  0x1f   : > { %258 = vperm.xlu0 %371, %v246_v13  }
  0x9a   : > { %v250_v20 = vpop.permute.xlu0 %249 }
  0x9b   : > { %v252_v21 = vmul.f32 %v250_v20, %v230_v16  ;;  %v253_v22 = vmul.f32 %v250_v20, %v231_v17  ;;  %v254_v23 = vmul.f32 %v250_v20, %v232_v18  ;;  %v255_v24 = vmul.f32 %v250_v20, %v233_v19 }
  0x9e   : > { %v259_v25 = vpop.permute.xlu0 %258 }
  0x9f   : > { %v261_v26 = vadd.f32 %v259_v25, %v252_v21  ;;  %v262_v27 = vadd.f32 %v259_v25, %v253_v22  ;;  %v263_v28 = vadd.f32 %v259_v25, %v254_v23  ;;  %v264_v29 = vadd.f32 %v259_v25, %v255_v24 }
  0xa1   : > { %v265_v30 = vmul.f32 0.2, %v261_v26  ;;  %v266_v31 = vmul.f32 0.2, %v262_v27  ;;  %v267_v32 = vmul.f32 0.2, %v263_v28 }
  0xa2   : > { %v268_v33 = vmul.f32 0.2, %v264_v29 }
  0xa3   : > { %v269_v34 = vmax.f32 %v261_v26, %v265_v30  ;;  %v270_v35 = vmax.f32 %v262_v27, %v266_v31  ;;  %v271_v36 = vmax.f32 %v263_v28, %v267_v32 }
  0xa4   : > { %v272_v37 = vmax.f32 %v264_v29, %v268_v33 }
  0xa5   : > { %v360_v38 = vpack.c.bf16 %v270_v35, %v269_v34 }
  0xa6   : > { %v361_v39 = vpack.c.bf16 %v272_v37, %v271_v36 }
  0xa7   : > { %289 = vst [vmem:[%s226_s10] sm:$0xff] %v360_v38 }
  0xa8   : > { %290 = vst [vmem:[%s226_s10 + $0x8] sm:$0xff] %v361_v39 }
  0xa9 PF: > { %s15_s18 = sadd.s32 1, %s380_s18  }
  0xaa   : > { %p12_p4 = scmp.ge.s32.totalorder %s15_s18, 4  }
  0xac   :  { %14 = sbr.rel (!%p12_p4) target bundleno = 1 (0x1), region = 70 }

// kernel: dnet_forward.10
= control target key start
LH: loop header
LB: loop body
LE: loop exit
PB: predicated region body
PF: predicated region fallthrough
CT: control target
= control target key end

     0   :  { %v285_v1 = vmov 0   ;;  %vm180_vm0 = vcmask 7168   ;;  %v286_v18 = vmov 0.0   ;;  %s393_s1 = inlined_call_operand.vmem [shape: bf16[128,256], index: 1, kind: input, shape index: {}]   ;;  %s394_s0 = inlined_call_operand.vmem [shape: bf16[16,128], index: 0, kind: input, shape index: {}]   ;;  %s395_s2 = inlined_call_operand.vmem [shape: bf16[16,256], index: 2, kind: output, shape index: {0}]   ;;  %s396_s3 = inlined_call_operand.vmem [shape: f32[16,1], index: 3, kind: output, shape index: {1}]   ;;  %s397_s4 = inlined_call_operand.vmem [shape: f32[16,1], index: 4, kind: output, shape index: {2}]  }
   0x1   :  { %v260_v0 = vld [vmem:[%s393_s1 + $0x4] ss:$8 sps:$4 sm:$0xff]   ;;  %151 = vmatprep.mubr.bf16.mxu0 %v285_v1  ;;  %v262_v2 = vld [vmem:[%s393_s1] ss:$8 sps:$4 sm:$0xff]   ;;  %v263_v3 = vld [vmem:[%s393_s1 + $0x14] ss:$8 sps:$4 sm:$0xff]  }
   0x2   :  { %119 = vmatprep.subr.bf16.mxu0 %v260_v0  ;;  %v265_v4 = vld [vmem:[%s393_s1 + $0x10] ss:$8 sps:$4 sm:$0xff]   ;;  %v266_v5 = vld [vmem:[%s393_s1 + $0x24] ss:$8 sps:$4 sm:$0xff]   ;;  %v268_v6 = vld [vmem:[%s393_s1 + $0x20] ss:$8 sps:$4 sm:$0xff]  }
   0x3   :  { %120 = vmatpush1.bf16.msra.mxu0 %v262_v2  ;;  %v269_v7 = vld [vmem:[%s393_s1 + $0x34] ss:$8 sps:$4 sm:$0xff]   ;;  %v271_v8 = vld [vmem:[%s393_s1 + $0x30] ss:$8 sps:$4 sm:$0xff]   ;;  %v272_v9 = vld [vmem:[%s393_s1 + $0x44] ss:$8 sps:$4 sm:$0xff]  }
   0x4   :  { %121 = vmatprep.subr.bf16.mxu0 %v263_v3  ;;  %v274_v10 = vld [vmem:[%s393_s1 + $0x40] ss:$8 sps:$4 sm:$0xff]   ;;  %v275_v11 = vld [vmem:[%s393_s1 + $0x54] ss:$8 sps:$4 sm:$0xff]   ;;  %v277_v12 = vld [vmem:[%s393_s1 + $0x50] ss:$8 sps:$4 sm:$0xff]  }
   0x5   :  { %v278_v13 = vld [vmem:[%s393_s1 + $0x64] ss:$8 sps:$4 sm:$0xff]   ;;  %v280_v14 = vld [vmem:[%s393_s1 + $0x60] ss:$8 sps:$4 sm:$0xff]   ;;  %v281_v15 = vld [vmem:[%s393_s1 + $0x74] ss:$8 sps:$4 sm:$0xff]  }
   0x6   :  { %v283_v16 = vld [vmem:[%s393_s1 + $0x70] ss:$8 sps:$4 sm:$0xff]   ;;  %v284_v17 = vld [vmem:[%s394_s0] sm:$0xff]   ;;  %181 = vst.msk [vmem:[#allocation2] sm:$0xff] %vm180_vm0, %v286_v18  ;;  %182 = vst.msk [vmem:[#allocation2 + $0x8] sm:$0xff] %vm180_vm0, %v286_v18 }
   0x7   :  { %122 = vmatpush1.bf16.msra.mxu0 %v265_v4  ;;  %183 = vst.msk [vmem:[#allocation3] sm:$0xff] %vm180_vm0, %v286_v18  ;;  %184 = vst.msk [vmem:[#allocation3 + $0x8] sm:$0xff] %vm180_vm0, %v286_v18 }
   0x8   :  { %123 = vmatprep.subr.bf16.mxu0 %v266_v5 }
   0xb   :  { %124 = vmatpush1.bf16.msra.mxu0 %v268_v6 }
   0xc   :  { %125 = vmatprep.subr.bf16.mxu0 %v269_v7 }
   0xd   :  { %v185_v33 = vld [vmem:[#allocation2] sm:$0xff]  ;;  %v186_v38 = vld [vmem:[#allocation2 + $0x8] sm:$0xff] }
   0xe   :  { %v198_v35 = vld [vmem:[#allocation3] sm:$0xff]  ;;  %v199_v41 = vld [vmem:[#allocation3 + $0x8] sm:$0xff] }
   0xf   :  { %126 = vmatpush1.bf16.msra.mxu0 %v271_v8 }
  0x10   :  { %127 = vmatprep.subr.bf16.mxu0 %v272_v9 }
  0x13   :  { %128 = vmatpush1.bf16.msra.mxu0 %v274_v10 }
  0x14   :  { %129 = vmatprep.subr.bf16.mxu0 %v275_v11 }
  0x17   :  { %130 = vmatpush1.bf16.msra.mxu0 %v277_v12 }
  0x18   :  { %131 = vmatprep.subr.bf16.mxu0 %v278_v13 }
  0x1b   :  { %132 = vmatpush1.bf16.msra.mxu0 %v280_v14 }
  0x1c   :  { %133 = vmatprep.subr.bf16.mxu0 %v281_v15 }
  0x1f   :  { %134 = vmatpush1.bf16.msra.mxu0 %v283_v16 }
  0x22   :  { %152 = vmatmul.mubr.bf16.vlgmr.msra.gmra.mrb[0].mxu0 %v284_v17 }
  0xf5   :  { %v153_v19 = vpop.f32.mrb[0].mxu0 }
  0xf6   :  { %v155_v20 = vpop.f32.mrb[1].mxu0  ;;  %v200_v21 = vmul.f32 %v153_v19, %v153_v19 }
  0xf7   :  { %v256_v22 = vpack.c.bf16 %v155_v20, %v153_v19  ;;  %v157_v23 = vpop.f32.mrb[2].mxu0  ;;  %v187_v24 = vadd.f32 %v155_v20, %v153_v19  ;;  %v201_v25 = vmul.f32 %v155_v20, %v155_v20 }
  0xf8   :  { %v159_v26 = vpop.f32.mrb[3].mxu0  ;;  %v202_v27 = vmul.f32 %v157_v23, %v157_v23 }
  0xf9   :  { %v257_v28 = vpack.c.bf16 %v159_v26, %v157_v23  ;;  %174 = vst [vmem:[%s395_s2] sm:$0xff] %v256_v22  ;;  %v203_v29 = vmul.f32 %v159_v26, %v159_v26  ;;  %188 = vadd.xlane.f32.xlu0 %v187_v24  ;;  %v204_v30 = vadd.f32 %v201_v25, %v200_v21 }
  0xfa   :  { %v190_v31 = vadd.f32 %v159_v26, %v157_v23 }
  0xfb   :  { %175 = vst [vmem:[%s395_s2 + $0x8] sm:$0xff] %v257_v28  ;;  %205 = vadd.xlane.f32.xlu1 %v204_v30  ;;  %v207_v32 = vadd.f32 %v203_v29, %v202_v27 }
  0xfd   :  { %191 = vadd.xlane.f32.xlu0 %v190_v31 }
  0xff   :  { %208 = vadd.xlane.f32.xlu1 %v207_v32 }
 0x186   :  { %v189_v34 = vpop.xlane.xlu0 %188 }
 0x187   :  { %v193_v36 = vadd.f32 %v189_v34, %v185_v33 }
 0x188   :  { %v206_v37 = vpop.xlane.xlu1 %205 }
 0x189   :  { %196 = vst.msk [vmem:[#allocation2] sm:$0xff] %vm180_vm0, %v193_v36  ;;  %v210_v39 = vadd.f32 %v206_v37, %v198_v35 }
 0x18a   :  { %v192_v40 = vpop.xlane.xlu0 %191 }
 0x18b   :  { %212 = vst.msk [vmem:[#allocation3] sm:$0xff] %vm180_vm0, %v210_v39  ;;  %v194_v42 = vadd.f32 %v192_v40, %v186_v38 }
 0x18c   :  { %v209_v43 = vpop.xlane.xlu1 %208 }
 0x18d   :  { %197 = vst.msk [vmem:[#allocation2 + $0x8] sm:$0xff] %vm180_vm0, %v194_v42  ;;  %v211_v44 = vadd.f32 %v209_v43, %v199_v41 }
 0x18f   :  { %213 = vst.msk [vmem:[#allocation3 + $0x8] sm:$0xff] %vm180_vm0, %v211_v44 }
 0x190   :  { %v217_v45 = vld [vmem:[#allocation2] sm:$0xff] }
 0x191   :  { %219 = vst.msk [vmem:[%s396_s3] sm:$0xff] %vm180_vm0, %v217_v45 }
 0x192   :  { %v221_v46 = vld [vmem:[#allocation3] sm:$0xff] }
 0x193   :  { %223 = vst.msk [vmem:[%s397_s4] sm:$0xff] %vm180_vm0, %v221_v46 }
 0x194   :  { %v218_v47 = vld [vmem:[#allocation2 + $0x8] sm:$0xff] }
 0x195   :  { %220 = vst.msk [vmem:[%s396_s3 + $0x8] sm:$0xff] %vm180_vm0, %v218_v47 }
 0x196   :  { %v222_v48 = vld [vmem:[#allocation3 + $0x8] sm:$0xff] }
 0x197   :  { %224 = vst.msk [vmem:[%s397_s4 + $0x8] sm:$0xff] %vm180_vm0, %v222_v48 }

// kernel: dnet_forward.11
= control target key start
LH: loop header
LB: loop body
LE: loop exit
PB: predicated region body
PF: predicated region fallthrough
CT: control target
= control target key end

     0   :  { %v117_v0 = vmov 0   ;;  %s184_s1 = inlined_call_operand.vmem [shape: f32[16,1], index: 1, kind: input, shape index: {}]   ;;  %s185_s2 = inlined_call_operand.vmem [shape: f32[16,1], index: 2, kind: input, shape index: {}]   ;;  %s186_s3 = inlined_call_operand.vmem [shape: f32[16,1], index: 3, kind: input, shape index: {}]   ;;  %s187_s4 = inlined_call_operand.vmem [shape: f32[16,1], index: 4, kind: input, shape index: {}]   ;;  %s188_s0 = inlined_call_operand.vmem [shape: bf16[16,256], index: 0, kind: input, shape index: {}]   ;;  %s189_s5 = inlined_call_operand.vmem [shape: bf16[16,256], index: 5, kind: output, shape index: {}]  }
   0x1   :  { %111 = vset.pattern.permute.xlu0 %v117_v0  ;;  %v26_v1 = vld [vmem:[%s184_s1] sm:$0xff]  ;;  %v27_v2 = vld [vmem:[%s184_s1 + $0x8] sm:$0xff]  ;;  %112 = vset.pattern.permute.xlu1 %v117_v0 }
   0x2   :  { %v30_v3 = vld [vmem:[%s185_s2] sm:$0xff]  ;;  %v28_v4 = vmul.f32 0.00390625, %v26_v1  ;;  %v31_v5 = vld [vmem:[%s185_s2 + $0x8] sm:$0xff]  ;;  %v29_v7 = vmul.f32 0.00390625, %v27_v2 }
   0x3   :  { %v32_v6 = vmul.f32 0.00390625, %v30_v3  ;;  %v33_v8 = vmul.f32 0.00390625, %v31_v5  ;;  %v42_v15 = vld [vmem:[%s186_s3] sm:$0xff]  ;;  %v43_v16 = vld [vmem:[%s186_s3 + $0x8] sm:$0xff] }
   0x4   :  { %v34_v9 = vmul.f32 %v28_v4, %v28_v4  ;;  %v35_v10 = vmul.f32 %v29_v7, %v29_v7  ;;  %v46_v21 = vld [vmem:[%s187_s4] sm:$0xff]  ;;  %v47_v23 = vld [vmem:[%s187_s4 + $0x8] sm:$0xff] }
   0x5   :  { %v20_v27 = vld [vmem:[%s188_s0] sm:$0xff]  ;;  %v21_v31 = vld [vmem:[%s188_s0 + $0x8] sm:$0xff] }
   0x6   :  { %v36_v11 = vsub.f32 %v32_v6, %v34_v9  ;;  %v37_v12 = vsub.f32 %v33_v8, %v35_v10  ;;  %v22_v28 = vunpack.c.l.bf16 %v20_v27  ;;  %v23_v29 = vunpack.c.h.bf16 %v20_v27 }
   0x7   :  { %v24_v34 = vunpack.c.l.bf16 %v21_v31  ;;  %v25_v35 = vunpack.c.h.bf16 %v21_v31 }
   0x8   :  { %v38_v13 = vadd.f32 1e-05, %v36_v11  ;;  %v39_v14 = vadd.f32 1e-05, %v37_v12 }
   0xa   :  { %113 = vrsqrt.f32 %v38_v13 }
   0xb   :  { %115 = vrsqrt.f32 %v39_v14 }
  0x14   :  { %v114_v17 = vpop.eup %113 }
  0x15   :  { %v116_v18 = vpop.eup %115  ;;  %v44_v19 = vmul.f32 %v114_v17, %v42_v15 }
  0x16   :  { %v45_v20 = vmul.f32 %v116_v18, %v43_v16 }
  0x17   :  { %54 = vperm.xlu0 %111, %v44_v19   ;;  %v48_v22 = vmul.f32 %v44_v19, %v28_v4 }
  0x18   :  { %v49_v24 = vmul.f32 %v45_v20, %v29_v7 }
  0x19   :  { %v50_v25 = vsub.f32 %v46_v21, %v48_v22 }
  0x1a   :  { %v51_v26 = vsub.f32 %v47_v23, %v49_v24 }
  0x1b   :  { %59 = vperm.xlu0 %111, %v45_v20   ;;  %68 = vperm.xlu1 %112, %v50_v25  }
  0x1f   :  { %73 = vperm.xlu1 %112, %v51_v26  }
  0x96   :  { %v55_v30 = vpop.permute.xlu0 %54 }
  0x97   :  { %v62_v32 = vmul.f32 %v55_v30, %v22_v28  ;;  %v63_v33 = vmul.f32 %v55_v30, %v23_v29 }
  0x9a   :  { %v60_v36 = vpop.permute.xlu0 %59  ;;  %v69_v37 = vpop.permute.xlu1 %68 }
  0x9b   :  { %v76_v38 = vadd.f32 %v69_v37, %v62_v32  ;;  %v77_v39 = vadd.f32 %v69_v37, %v63_v33  ;;  %v64_v40 = vmul.f32 %v60_v36, %v24_v34  ;;  %v65_v41 = vmul.f32 %v60_v36, %v25_v35 }
  0x9d   :  { %v80_v42 = vmul.f32 0.2, %v76_v38  ;;  %v81_v43 = vmul.f32 0.2, %v77_v39 }
  0x9e   :  { %v74_v44 = vpop.permute.xlu1 %73 }
  0x9f   :  { %v84_v45 = vmax.f32 %v76_v38, %v80_v42  ;;  %v85_v46 = vmax.f32 %v77_v39, %v81_v43  ;;  %v78_v47 = vadd.f32 %v74_v44, %v64_v40  ;;  %v79_v48 = vadd.f32 %v74_v44, %v65_v41 }
  0xa1   :  { %v108_v49 = vpack.c.bf16 %v85_v46, %v84_v45  ;;  %v82_v50 = vmul.f32 0.2, %v78_v47  ;;  %v83_v51 = vmul.f32 0.2, %v79_v48 }
  0xa3   :  { %v86_v52 = vmax.f32 %v78_v47, %v82_v50  ;;  %v87_v53 = vmax.f32 %v79_v48, %v83_v51  ;;  %100 = vst [vmem:[%s189_s5] sm:$0xff] %v108_v49 }
  0xa5   :  { %v109_v54 = vpack.c.bf16 %v87_v53, %v86_v52 }
  0xa7   :  { %101 = vst [vmem:[%s189_s5 + $0x8] sm:$0xff] %v109_v54 }

// kernel: dnet_forward.12
= control target key start
LH: loop header
LB: loop body
LE: loop exit
PB: predicated region body
PF: predicated region fallthrough
CT: control target
= control target key end

     0   :  { %vm241_vm0 = vcmask 7168   ;;  %v430_v20 = vmov 0.0   ;;  %vm254_vm1 = vcmask 523264   ;;  %vm232_vm2 = vcmask 519168   ;;  %s588_s1 = inlined_call_operand.vmem [shape: bf16[256,64], index: 1, kind: input, shape index: {}]   ;;  %s589_s0 = inlined_call_operand.vmem [shape: bf16[32,256], index: 0, kind: input, shape index: {}]   ;;  %s590_s2 = inlined_call_operand.vmem [shape: bf16[32,64], index: 2, kind: output, shape index: {0}]   ;;  %s591_s3 = inlined_call_operand.vmem [shape: f32[32,1], index: 3, kind: output, shape index: {1}]   ;;  %s592_s4 = inlined_call_operand.vmem [shape: f32[32,1], index: 4, kind: output, shape index: {2}]  }
   0x1   :  { %v408_v0 = vld [vmem:[%s588_s1 + $0x40] sm:$0xff]   ;;  %v410_v2 = vld [vmem:[%s588_s1 + $0x48] sm:$0xff]   ;;  %v412_v4 = vld [vmem:[%s588_s1 + $0x50] sm:$0xff]   ;;  %244 = vst.msk [vmem:[#allocation2 + $0x10] sm:$0xff] %vm241_vm0, %v430_v20 }
   0x2   :  { %v409_v1 = vld [vmem:[%s588_s1] sm:$0xff]   ;;  %363 = vmatprep.subr.bf16.mxu0 %v408_v0  ;;  %391 = vmatprep.subr.bf16.mxu1 %v408_v0  ;;  %v411_v3 = vld [vmem:[%s588_s1 + $0x8] sm:$0xff]   ;;  %v413_v5 = vld [vmem:[%s588_s1 + $0x10] sm:$0xff]   ;;  %242 = vst.msk [vmem:[#allocation2] sm:$0xff] %vm241_vm0, %v430_v20 }
   0x3   :  { %364 = vmatpush3.bf16.msra.mxu0 %v409_v1  ;;  %399 = vmatpush3.bf16.msra.mxu1 %v409_v1  ;;  %v414_v6 = vld [vmem:[%s588_s1 + $0x58] sm:$0xff]   ;;  %v416_v8 = vld [vmem:[%s588_s1 + $0x60] sm:$0xff]   ;;  %v418_v10 = vld [vmem:[%s588_s1 + $0x68] sm:$0xff]   ;;  %243 = vst.msk [vmem:[#allocation2 + $0x8] sm:$0xff] %vm241_vm0, %v430_v20 }
   0x4   :  { %365 = vmatprep.subr.bf16.mxu0 %v410_v2  ;;  %392 = vmatprep.subr.bf16.mxu1 %v410_v2  ;;  %v415_v7 = vld [vmem:[%s588_s1 + $0x18] sm:$0xff]   ;;  %v417_v9 = vld [vmem:[%s588_s1 + $0x20] sm:$0xff]   ;;  %v419_v13 = vld [vmem:[%s588_s1 + $0x28] sm:$0xff]   ;;  %245 = vst.msk [vmem:[#allocation2 + $0x18] sm:$0xff] %vm241_vm0, %v430_v20 }
   0x5   :  { %v426_v11 = vld [vmem:[%s589_s0 + $0x4] ss:$8 sps:$4 sm:$0xff]   ;;  %v429_v12 = vld [vmem:[%s589_s0 + $0x14] ss:$8 sps:$4 sm:$0xff]   ;;  %v424_v18 = vld [vmem:[%s589_s0] ss:$8 sps:$4 sm:$0xff]  }
   0x6   :  { %v420_v14 = vld [vmem:[%s588_s1 + $0x70] sm:$0xff]   ;;  %199 = vmatprep.mubr.bf16.mxu0 %v426_v11  ;;  %207 = vmatprep.mubr.bf16.mxu1 %v429_v12  ;;  %v422_v16 = vld [vmem:[%s588_s1 + $0x78] sm:$0xff]   ;;  %246 = vst.msk [vmem:[#allocation3] sm:$0xff] %vm241_vm0, %v430_v20  ;;  %247 = vst.msk [vmem:[#allocation3 + $0x8] sm:$0xff] %vm241_vm0, %v430_v20 }
   0x7   :  { %366 = vmatpush3.bf16.msra.mxu0 %v411_v3  ;;  %400 = vmatpush3.bf16.msra.mxu1 %v411_v3  ;;  %v421_v15 = vld [vmem:[%s588_s1 + $0x30] sm:$0xff]   ;;  %v423_v17 = vld [vmem:[%s588_s1 + $0x38] sm:$0xff]   ;;  %248 = vst.msk [vmem:[#allocation3 + $0x10] sm:$0xff] %vm241_vm0, %v430_v20  ;;  %249 = vst.msk [vmem:[#allocation3 + $0x18] sm:$0xff] %vm241_vm0, %v430_v20 }
   0x8   :  { %367 = vmatprep.subr.bf16.mxu0 %v412_v4  ;;  %393 = vmatprep.subr.bf16.mxu1 %v412_v4  ;;  %v427_v19 = vld [vmem:[%s589_s0 + $0x10] ss:$8 sps:$4 sm:$0xff]  }
   0x9   :  { %v252_v49 = vld [vmem:[#allocation2 + $0x10] sm:$0xff]  ;;  %v250_v50 = vld [vmem:[#allocation2] sm:$0xff] }
   0xa   :  { %v251_v56 = vld [vmem:[#allocation2 + $0x8] sm:$0xff] }
   0xb   :  { %368 = vmatpush3.bf16.msra.mxu0 %v413_v5  ;;  %401 = vmatpush3.bf16.msra.mxu1 %v413_v5  ;;  %v253_v55 = vld [vmem:[#allocation2 + $0x18] sm:$0xff] }
   0xc   :  { %369 = vmatprep.subr.bf16.mxu0 %v414_v6  ;;  %394 = vmatprep.subr.bf16.mxu1 %v414_v6 }
   0xd   :  { %v277_v61 = vld [vmem:[#allocation3 + $0x8] sm:$0xff]  ;;  %v276_v62 = vld [vmem:[#allocation3] sm:$0xff] }
   0xe   :  { %v279_v3 = vld [vmem:[#allocation3 + $0x18] sm:$0xff]  ;;  %v278_v6 = vld [vmem:[#allocation3 + $0x10] sm:$0xff] }
   0xf   :  { %370 = vmatpush3.bf16.msra.mxu0 %v415_v7  ;;  %402 = vmatpush3.bf16.msra.mxu1 %v415_v7 }
  0x10   :  { %371 = vmatprep.subr.bf16.mxu0 %v416_v8  ;;  %395 = vmatprep.subr.bf16.mxu1 %v416_v8 }
  0x13   :  { %372 = vmatpush3.bf16.msra.mxu0 %v417_v9  ;;  %403 = vmatpush3.bf16.msra.mxu1 %v417_v9 }
  0x14   :  { %373 = vmatprep.subr.bf16.mxu0 %v418_v10  ;;  %396 = vmatprep.subr.bf16.mxu1 %v418_v10 }
  0x17   :  { %374 = vmatpush3.bf16.msra.mxu0 %v419_v13  ;;  %404 = vmatpush3.bf16.msra.mxu1 %v419_v13 }
  0x18   :  { %375 = vmatprep.subr.bf16.mxu0 %v420_v14  ;;  %397 = vmatprep.subr.bf16.mxu1 %v420_v14 }
  0x1b   :  { %376 = vmatpush3.bf16.msra.mxu0 %v421_v15  ;;  %405 = vmatpush3.bf16.msra.mxu1 %v421_v15 }
  0x1c   :  { %377 = vmatprep.subr.bf16.mxu0 %v422_v16  ;;  %398 = vmatprep.subr.bf16.mxu1 %v422_v16 }
  0x1f   :  { %378 = vmatpush3.bf16.msra.mxu0 %v423_v17  ;;  %406 = vmatpush3.bf16.msra.mxu1 %v423_v17 }
  0x22   :  { %200 = vmatmul.mubr.bf16.vlgmr.msra.gmra.mrb[0].mxu0 %v424_v18  ;;  %208 = vmatmul.mubr.bf16.vlgmr.msra.gmra.mrb[0].mxu1 %v427_v19 }
  0xf5   :  { %v379_v21 = vpop.f32.mrb[0].mxu0  ;;  %v385_v22 = vpop.f32.mrb[0].mxu1 }
  0xf6   :  { %v380_v23 = vpop.f32.mrb[1].mxu0  ;;  %v386_v24 = vpop.f32.mrb[1].mxu1 }
  0xf7   :  { %v381_v25 = vadd.f32 %v380_v23, %v379_v21  ;;  %v387_v26 = vadd.f32 %v386_v24, %v385_v22  ;;  %v382_v27 = vpop.f32.mrb[2].mxu0  ;;  %v388_v28 = vpop.f32.mrb[2].mxu1 }
  0xf8   :  { %v383_v29 = vpop.f32.mrb[3].mxu0  ;;  %v389_v30 = vpop.f32.mrb[3].mxu1 }
  0xf9   :  { %v359_v31 = vpack.c.bf16 %v381_v25, %v381_v25  ;;  %v361_v32 = vpack.c.bf16 %v387_v26, %v387_v26  ;;  %v384_v33 = vadd.f32 %v383_v29, %v382_v27  ;;  %v390_v34 = vadd.f32 %v389_v30, %v388_v28 }
  0xfa   :  { %v261_v35 = vsel %vm254_vm1, %v387_v26, 0.0  ;;  %v255_v36 = vsel %vm254_vm1, %v381_v25, 0.0  ;;  %v280_v42 = vmul.f32 %v381_v25, %v381_v25  ;;  %v282_v46 = vmul.f32 %v387_v26, %v387_v26 }
  0xfb   :  { %233 = vst.msk [vmem:[%s590_s2] sm:$0xf] %vm232_vm2, %v359_v31  ;;  %235 = vst.msk [vmem:[%s590_s2 + $0x8] sm:$0xf] %vm232_vm2, %v361_v32  ;;  %v360_v37 = vpack.c.bf16 %v384_v33, %v384_v33  ;;  %v362_v38 = vpack.c.bf16 %v390_v34, %v390_v34  ;;  %262 = vadd.xlane.f32.xlu1 %v261_v35  ;;  %256 = vadd.xlane.f32.xlu0 %v255_v36  ;;  %v264_v39 = vsel %vm254_vm1, %v390_v34, 0.0 }
  0xfc   :  { %v258_v40 = vsel %vm254_vm1, %v384_v33, 0.0  ;;  %v281_v41 = vmul.f32 %v384_v33, %v384_v33  ;;  %v284_v44 = vsel %vm254_vm1, %v280_v42, 0.0  ;;  %v283_v45 = vmul.f32 %v390_v34, %v390_v34 }
  0xfd   :  { %234 = vst.msk [vmem:[%s590_s2 + $0x4] sm:$0xf] %vm232_vm2, %v360_v37  ;;  %236 = vst.msk [vmem:[%s590_s2 + $0xc] sm:$0xf] %vm232_vm2, %v362_v38  ;;  %v290_v48 = vsel %vm254_vm1, %v282_v46, 0.0 }
  0xfe   :  { %v287_v43 = vsel %vm254_vm1, %v281_v41, 0.0  ;;  %v293_v47 = vsel %vm254_vm1, %v283_v45, 0.0 }
  0xff   :  { %265 = vadd.xlane.f32.xlu1 %v264_v39  ;;  %259 = vadd.xlane.f32.xlu0 %v258_v40 }
 0x103   :  { %288 = vadd.xlane.f32.xlu1 %v287_v43  ;;  %285 = vadd.xlane.f32.xlu0 %v284_v44 }
 0x107   :  { %294 = vadd.xlane.f32.xlu1 %v293_v47  ;;  %291 = vadd.xlane.f32.xlu0 %v290_v48 }
 0x188   :  { %v263_v51 = vpop.xlane.xlu1 %262  ;;  %v257_v52 = vpop.xlane.xlu0 %256 }
 0x189   :  { %v269_v53 = vadd.f32 %v263_v51, %v252_v49  ;;  %v267_v54 = vadd.f32 %v257_v52, %v250_v50 }
 0x18b   :  { %274 = vst.msk [vmem:[#allocation2 + $0x10] sm:$0xff] %vm241_vm0, %v269_v53  ;;  %272 = vst.msk [vmem:[#allocation2] sm:$0xff] %vm241_vm0, %v267_v54 }
 0x18c   :  { %v266_v57 = vpop.xlane.xlu1 %265  ;;  %v260_v58 = vpop.xlane.xlu0 %259 }
 0x18d   :  { %v270_v59 = vadd.f32 %v266_v57, %v253_v55  ;;  %v268_v60 = vadd.f32 %v260_v58, %v251_v56 }
 0x18f   :  { %275 = vst.msk [vmem:[#allocation2 + $0x18] sm:$0xff] %vm241_vm0, %v270_v59  ;;  %273 = vst.msk [vmem:[#allocation2 + $0x8] sm:$0xff] %vm241_vm0, %v268_v60 }
 0x190   :  { %v289_v63 = vpop.xlane.xlu1 %288  ;;  %v286_v0 = vpop.xlane.xlu0 %285 }
 0x191   :  { %v297_v1 = vadd.f32 %v289_v63, %v277_v61  ;;  %v296_v2 = vadd.f32 %v286_v0, %v276_v62 }
 0x192   :  { %v309_v4 = vld [vmem:[#allocation2 + $0x10] sm:$0xff]  ;;  %v307_v5 = vld [vmem:[#allocation2] sm:$0xff] }
 0x193   :  { %313 = vst.msk [vmem:[%s591_s3 + $0x10] sm:$0xff] %vm241_vm0, %v309_v4  ;;  %311 = vst.msk [vmem:[%s591_s3] sm:$0xff] %vm241_vm0, %v307_v5 }
 0x194   :  { %301 = vst.msk [vmem:[#allocation3 + $0x8] sm:$0xff] %vm241_vm0, %v297_v1  ;;  %300 = vst.msk [vmem:[#allocation3] sm:$0xff] %vm241_vm0, %v296_v2  ;;  %v295_v7 = vpop.xlane.xlu1 %294  ;;  %v292_v8 = vpop.xlane.xlu0 %291 }
 0x195   :  { %v299_v9 = vadd.f32 %v295_v7, %v279_v3  ;;  %v298_v10 = vadd.f32 %v292_v8, %v278_v6 }
 0x196   :  { %v310_v11 = vld [vmem:[#allocation2 + $0x18] sm:$0xff]  ;;  %v308_v12 = vld [vmem:[#allocation2 + $0x8] sm:$0xff] }
 0x197   :  { %314 = vst.msk [vmem:[%s591_s3 + $0x18] sm:$0xff] %vm241_vm0, %v310_v11  ;;  %312 = vst.msk [vmem:[%s591_s3 + $0x8] sm:$0xff] %vm241_vm0, %v308_v12 }
 0x198   :  { %303 = vst.msk [vmem:[#allocation3 + $0x18] sm:$0xff] %vm241_vm0, %v299_v9  ;;  %302 = vst.msk [vmem:[#allocation3 + $0x10] sm:$0xff] %vm241_vm0, %v298_v10 }
 0x19b   :  { %v316_v13 = vld [vmem:[#allocation3 + $0x8] sm:$0xff]  ;;  %v315_v14 = vld [vmem:[#allocation3] sm:$0xff] }
 0x19c   :  { %320 = vst.msk [vmem:[%s592_s4 + $0x8] sm:$0xff] %vm241_vm0, %v316_v13  ;;  %319 = vst.msk [vmem:[%s592_s4] sm:$0xff] %vm241_vm0, %v315_v14 }
 0x19f   :  { %v318_v15 = vld [vmem:[#allocation3 + $0x18] sm:$0xff]  ;;  %v317_v16 = vld [vmem:[#allocation3 + $0x10] sm:$0xff] }
 0x1a0   :  { %322 = vst.msk [vmem:[%s592_s4 + $0x18] sm:$0xff] %vm241_vm0, %v318_v15  ;;  %321 = vst.msk [vmem:[%s592_s4 + $0x10] sm:$0xff] %vm241_vm0, %v317_v16 }

// kernel: dnet_forward.13
= control target key start
LH: loop header
LB: loop body
LE: loop exit
PB: predicated region body
PF: predicated region fallthrough
CT: control target
= control target key end

     0   :  { %v361_v2 = vmov 0   ;;  %s513_s0 = inlined_call_operand.vmem [shape: bf16[32,64], index: 0, kind: input, shape index: {}]   ;;  %s514_s1 = inlined_call_operand.vmem [shape: f32[32,1], index: 1, kind: input, shape index: {}]   ;;  %s515_s2 = inlined_call_operand.vmem [shape: f32[32,1], index: 2, kind: input, shape index: {}]   ;;  %s516_s3 = inlined_call_operand.vmem [shape: f32[32,1], index: 3, kind: input, shape index: {}]   ;;  %s517_s4 = inlined_call_operand.vmem [shape: f32[32,1], index: 4, kind: input, shape index: {}]   ;;  %s518_s5 = inlined_call_operand.vmem [shape: f32[32,64], index: 5, kind: input, shape index: {}]   ;;  %s519_s6 = inlined_call_operand.vmem [shape: f32[64,4], index: 6, kind: input, shape index: {}]   ;;  %s520_s7 = inlined_call_operand.hbm [shape: f32[1,4], index: 7, kind: output, shape index: {}]  }
   0x1   :  { %v37_v0 = vld [vmem:[%s514_s1 + $0x10] sm:$0xff]  ;;  %324 = vset.pattern.permute.xlu1 %v361_v2  ;;  %323 = vset.pattern.permute.xlu0 %v361_v2  ;;  %v35_v5 = vld [vmem:[%s514_s1] sm:$0xff]  ;;  %v38_v9 = vld [vmem:[%s514_s1 + $0x18] sm:$0xff] }
   0x2   :  { %v45_v1 = vld [vmem:[%s515_s2 + $0x10] sm:$0xff]  ;;  %v41_v3 = vmul.f32 0.015625, %v37_v0  ;;  %v43_v6 = vld [vmem:[%s515_s2] sm:$0xff]  ;;  %v39_v7 = vmul.f32 0.015625, %v35_v5  ;;  %v46_v10 = vld [vmem:[%s515_s2 + $0x18] sm:$0xff]  ;;  %v42_v12 = vmul.f32 0.015625, %v38_v9 }
   0x3   :  { %v49_v4 = vmul.f32 0.015625, %v45_v1  ;;  %v47_v8 = vmul.f32 0.015625, %v43_v6  ;;  %v50_v13 = vmul.f32 0.015625, %v46_v10  ;;  %v36_v14 = vld [vmem:[%s514_s1 + $0x8] sm:$0xff] }
   0x4   :  { %v53_v11 = vmul.f32 %v41_v3, %v41_v3  ;;  %v44_v15 = vld [vmem:[%s515_s2 + $0x8] sm:$0xff]  ;;  %v51_v16 = vmul.f32 %v39_v7, %v39_v7  ;;  %v40_v17 = vmul.f32 0.015625, %v36_v14  ;;  %v54_v20 = vmul.f32 %v42_v12, %v42_v12 }
   0x5   :  { %v48_v18 = vmul.f32 0.015625, %v44_v15 }
   0x6   :  { %v57_v19 = vsub.f32 %v49_v4, %v53_v11 }
   0x7   :  { %12 = vsyncpa [#allocation3], 0  ;;  %v55_v21 = vsub.f32 %v47_v8, %v51_v16  ;;  %v52_v22 = vmul.f32 %v40_v17, %v40_v17  ;;  %v58_v24 = vsub.f32 %v50_v13, %v54_v20  ;;  %v69_v29 = vld [vmem:[%s516_s3 + $0x10] sm:$0xff]  ;;  %v67_v30 = vld [vmem:[%s516_s3] sm:$0xff]  ;;  %v362_v56 = vmov 0.0|0.0  }
   0x8   :  { %v61_v23 = vadd.f32 1e-05, %v57_v19  ;;  %v70_v32 = vld [vmem:[%s516_s3 + $0x18] sm:$0xff]  ;;  %v68_v35 = vld [vmem:[%s516_s3 + $0x8] sm:$0xff]  ;;  %v75_v42 = vld [vmem:[%s517_s4] sm:$0xff]  ;;  %306 = vmatprep.subr.bf16.mxu0 %v362_v56  ;;  %vm363_vm0 = vmmov 0  }
   0x9   :  { %v59_v25 = vadd.f32 1e-05, %v55_v21  ;;  %v56_v26 = vsub.f32 %v48_v18, %v52_v22  ;;  %v62_v27 = vadd.f32 1e-05, %v58_v24  ;;  %v76_v43 = vld [vmem:[%s517_s4 + $0x8] sm:$0xff]  ;;  %v78_v49 = vld [vmem:[%s517_s4 + $0x18] sm:$0xff] }
   0xa   :  { %325 = vrsqrt.f32 %v61_v23  ;;  %v77_v50 = vld [vmem:[%s517_s4 + $0x10] sm:$0xff]  ;;  %v165_v53 = vld [vmem:[%s519_s6] sm:$0xff]  ;;  %v166_v54 = vld [vmem:[%s519_s6 + $0x8] sm:$0xff]  ;;  %v364_v59 = vmov 0.0   ;;  %vm151_vm1 = vcmask 523264   ;;  %vm252_vm2 = vcmask 24576  }
   0xb   :  { %327 = vrsqrt.f32 %v59_v25  ;;  %v60_v28 = vadd.f32 1e-05, %v56_v26  ;;  %v167_v55 = vld [vmem:[%s519_s6 + $0x10] sm:$0xff]  ;;  %v307_v57 = vpack.c.bf16 %v166_v54, %v165_v53  ;;  %v168_v58 = vld [vmem:[%s519_s6 + $0x18] sm:$0xff]  ;;  %303 = vmatprep.mubr.msk.f32.mxu0 %vm363_vm0, %v364_v59  ;;  %v169_v61 = vld [vmem:[%s519_s6 + $0x20] sm:$0xff] }
   0xc   :  { %329 = vrsqrt.f32 %v62_v27  ;;  %v310_v60 = vpack.c.bf16 %v168_v58, %v167_v55  ;;  %v170_v62 = vld [vmem:[%s519_s6 + $0x28] sm:$0xff]  ;;  %v171_v0 = vld [vmem:[%s519_s6 + $0x30] sm:$0xff]  ;;  %v172_v1 = vld [vmem:[%s519_s6 + $0x38] sm:$0xff] }
   0xd   :  { %331 = vrsqrt.f32 %v60_v28  ;;  %308 = vmatpush3.bf16.msra.mxu0 %v307_v57  ;;  %v313_v63 = vpack.c.bf16 %v170_v62, %v169_v61  ;;  %v316_v2 = vpack.c.bf16 %v172_v1, %v171_v0  ;;  %v270_v4 = vld [vmem:[%s513_s0] sm:$0xff]   ;;  %v277_v9 = vld [vmem:[%s513_s0 + $0x8] sm:$0xff]  }
   0xe   :  { %309 = vmatprep.subr.bf16.mxu0 %v362_v56  ;;  %v271_v6 = vunpack.c.l.bf16 %v270_v4  ;;  %v272_v8 = vunpack.c.h.bf16 %v270_v4  ;;  %v275_v13 = vunpack.c.l.bf16 %v277_v9  ;;  %v143_v23 = vld [vmem:[%s518_s5] sm:$0xff]  ;;  %v144_v25 = vld [vmem:[%s518_s5 + $0x8] sm:$0xff] }
  0x11   :  { %311 = vmatpush3.bf16.msra.mxu0 %v310_v60 }
  0x12   :  { %312 = vmatprep.subr.bf16.mxu0 %v362_v56 }
  0x14   :  { %v326_v31 = vpop.eup %325 }
  0x15   :  { %v328_v33 = vpop.eup %327  ;;  %v73_v34 = vmul.f32 %v326_v31, %v69_v29  ;;  %314 = vmatpush3.bf16.msra.mxu0 %v313_v63 }
  0x16   :  { %v330_v36 = vpop.eup %329  ;;  %v71_v37 = vmul.f32 %v328_v33, %v67_v30  ;;  %315 = vmatprep.subr.bf16.mxu0 %v362_v56 }
  0x17   :  { %v332_v38 = vpop.eup %331  ;;  %99 = vperm.xlu1 %324, %v73_v34   ;;  %v74_v39 = vmul.f32 %v330_v36, %v70_v32  ;;  %v81_v47 = vmul.f32 %v73_v34, %v41_v3  ;;  %v146_v36 = vld [vmem:[%s518_s5 + $0x18] sm:$0xff] }
  0x18   :  { %89 = vperm.xlu0 %323, %v71_v37   ;;  %v79_v40 = vmul.f32 %v71_v37, %v39_v7  ;;  %v72_v41 = vmul.f32 %v332_v38, %v68_v35  ;;  %v145_v35 = vld [vmem:[%s518_s5 + $0x10] sm:$0xff]  ;;  %s365_s5 = smov [#allocation2]  }
  0x19   :  { %v82_v46 = vmul.f32 %v74_v39, %v42_v12  ;;  %v85_v52 = vsub.f32 %v77_v50, %v81_v47  ;;  %317 = vmatpush3.bf16.msra.mxu0 %v316_v2  ;;  %v276_v12 = vunpack.c.h.bf16 %v277_v9  ;;  %s260_s29 = sshll.u32 %s365_s5, 4  ;;  %s261_s29 = int_to_ptr.vmem [resolvable:$true] %s260_s29 }
  0x1a   :  { %v80_v44 = vmul.f32 %v72_v41, %v40_v17  ;;  %v83_v45 = vsub.f32 %v75_v42, %v79_v40  ;;  %s337_s30 = scalar_lea.vmem %s261_s29, 16  ;;  %s341_s8 = scalar_lea.vmem %s261_s29, 32 }
  0x1b   :  { %104 = vperm.xlu1 %324, %v74_v39   ;;  %v86_v51 = vsub.f32 %v78_v49, %v82_v46  ;;  %p338_p0 = scmp.ne.s32.totalorder %s261_s29, %s337_s30  ;;  %p342_p1 = scmp.lt.s32.totalorder %s261_s29, %s261_s29 }
  0x1c   :  { %94 = vperm.xlu0 %323, %v72_v41   ;;  %v84_v48 = vsub.f32 %v76_v43, %v80_v44  ;;  %p343_p2 = scmp.lt.s32.totalorder %s341_s8, %s337_s30 }
  0x1e   :  { %p344_p3 = por %p343_p2, %p342_p1 }
  0x1f   :  { %113 = vperm.xlu1 %324, %v83_v45  }
  0x20   :  { %118 = vperm.xlu0 %323, %v84_v48   ;;  %p345_p4 = pnand %p344_p3, %p338_p0 }
  0x23   :  { %128 = vperm.xlu1 %324, %v86_v51  }
  0x24   :  { %123 = vperm.xlu0 %323, %v85_v52  }
  0x96   :  { %v100_v3 = vpop.permute.xlu1 %99 }
  0x97   :  { %v90_v5 = vpop.permute.xlu0 %89  ;;  %v109_v21 = vmul.f32 %v275_v13, %v100_v3 }
  0x98   :  { %v107_v11 = vmul.f32 %v271_v6, %v90_v5 }
  0x9a   :  { %v105_v7 = vpop.permute.xlu1 %104 }
  0x9b   :  { %v95_v10 = vpop.permute.xlu0 %94  ;;  %v110_v19 = vmul.f32 %v276_v12, %v105_v7 }
  0x9c   :  { %v108_v14 = vmul.f32 %v272_v8, %v95_v10 }
  0x9e   :  { %v114_v15 = vpop.permute.xlu1 %113 }
  0x9f   :  { %v119_v16 = vpop.permute.xlu0 %118  ;;  %v131_v17 = vadd.f32 %v114_v15, %v107_v11 }
  0xa0   :  { %v132_v18 = vadd.f32 %v119_v16, %v108_v14 }
  0xa1   :  { %v135_v20 = vmul.f32 0.2, %v131_v17 }
  0xa2   :  { %v136_v22 = vmul.f32 0.2, %v132_v18  ;;  %v129_v24 = vpop.permute.xlu1 %128 }
  0xa3   :  { %v139_v26 = vmax.f32 %v131_v17, %v135_v20  ;;  %v124_v27 = vpop.permute.xlu0 %123  ;;  %v134_v28 = vadd.f32 %v129_v24, %v110_v19 }
  0xa4   :  { %v140_v29 = vmax.f32 %v132_v18, %v136_v22  ;;  %v133_v30 = vadd.f32 %v124_v27, %v109_v21 }
  0xa5   :  { %v147_v31 = vmul.f32 %v143_v23, %v139_v26  ;;  %v138_v32 = vmul.f32 0.2, %v134_v28 }
  0xa6   :  { %v148_v33 = vmul.f32 %v144_v25, %v140_v29  ;;  %v137_v34 = vmul.f32 0.2, %v133_v30 }
  0xa7   :  { %v142_v37 = vmax.f32 %v134_v28, %v138_v32  ;;  %v152_v39 = vsel %vm151_vm1, %v147_v31, 0.0 }
  0xa8   :  { %v141_v38 = vmax.f32 %v133_v30, %v137_v34  ;;  %v153_v40 = vsel %vm151_vm1, %v148_v33, 0.0 }
  0xa9   :  { %v150_v42 = vmul.f32 %v146_v36, %v142_v37  ;;  %v154_v43 = vadd.f32 %v153_v40, %v152_v39 }
  0xaa   :  { %v149_v41 = vmul.f32 %v145_v35, %v141_v38 }
  0xab   :  { %v157_v46 = vsel %vm151_vm1, %v150_v42, 0.0 }
  0xac   :  { %v155_v44 = vsel %vm151_vm1, %v149_v41, 0.0 }
  0xad   :  { %v156_v45 = vadd.f32 %v155_v44, %v154_v43 }
  0xaf   :  { %v158_v47 = vadd.f32 %v157_v46, %v156_v45 }
  0xb1   :  { %v159_v48 = vrot.slane %v158_v47, 4 }
  0xb3   :  { %v160_v49 = vadd.f32 %v159_v48, %v158_v47 }
  0xb5   :  { %v161_v50 = vrot.slane %v160_v49, 2 }
  0xb7   :  { %v162_v51 = vadd.f32 %v161_v50, %v160_v49 }
  0xb9   :  { %v163_v52 = vrot.slane %v162_v51, 1 }
  0xbb   :  { %v164_v53 = vadd.f32 %v163_v52, %v162_v51 }
  0xbd   :  { %304 = vmatmul.mubr.msk.f32.vlgmr.msra.gmra.mrb[0].mxu0 %vm151_vm1, %v164_v53 }
 0x190   :  { %v242_v54 = vpop.f32.mrb[0].mxu0 }
 0x191   :  { %v246_v55 = vsub.f32 0.0, %v242_v54  ;;  %v305_v56 = vpop.f32.mrb[1].mxu0 }
 0x193   :  { %v247_v57 = vmul.f32 1.442695, %v246_v55 }
 0x195   :  { %333 = vpow2.f32 %v247_v57 }
 0x19f   :  { %v334_v58 = vpop.eup %333 }
 0x1a0   :  { %v249_v59 = vadd.f32 1.0, %v334_v58 }
 0x1a2   :  { %335 = vrcp.f32 %v249_v59 }
 0x1ac   :  { %v336_v60 = vpop.eup %335 }
 0x1ad   :  { %253 = vst.msk [vmem:[#allocation2] sm:$0x1] %vm252_vm2, %v336_v60 }
 0x1ae   :  { %348 = shalt.err (!%p345_p4)
}
 0x1af   :  { %s349_s11 = scalar_lea.hbm %s520_s7, 16 }
 0x1b0   :  { %p350_p5 = scmp.ne.s32.totalorder %s520_s7, %s349_s11  ;;  %p353_p6 = scmp.lt.u32.totalorder %s349_s11, %s520_s7 }
 0x1b2   :  { %p355_p7 = pnand %p353_p6, %p350_p5 }
 0x1b4   :  { %358 = shalt.err (!%p355_p7)
}
 0x1b5   :  { %263 = dma.vmem_to_hbm [thread:$0]  %s261_s29, 16, %s520_s7, [#allocation3]  }
 0x1b6   :  { %359 = dma.done.wait [#allocation3], 16  }
 0x1b7   :  { %360 = vsyncadd [#allocation3], 4294967280 }
 0x1b8   :  { %267 = vsyncpa [#allocation3], 1 }

</bundles_post_ra>
